<compile_context>
chip_gen: v7x
topology: tpu7x:2x2x1
jax: 0.10.0
libtpu: 0.0.40
codegen_flags: <defaults>
</compile_context>

<pallas_src>
import numpy as np
import jax
import jax.numpy as jnp
from jax.experimental import pallas as pl
from jax.experimental.pallas import tpu as pltpu


# ----------------------------- hyperparameters -----------------------------
N_MEL_CHANNELS = 16
REF_ENC_FILTERS = [4, 8]          # K = 2 convs
REF_ENC_GRU_SIZE = 32
TOKEN_NUM = 8
TOKEN_EMBEDDING_SIZE = 32
NUM_HEADS = 4
BN_EPS = 1e-5


# ------------------------------ fused kernel -------------------------------
def gst_kernel(x_ref, a1_ref, bn1_ref, c1i_ref, c1it_ref,
               a2_ref, bn2_ref, c2i_ref, c2it_ref,
               wihb_ref, bihb_ref, whh_ref, bhh_ref,
               wq_ref, kb_ref, vb_ref, bmask_ref,
               out_ref):
    f32 = jnp.float32
    x = x_ref[...]                                   # [N, Ty*n_mels]
    N = x.shape[0]

    def conv_bn_relu(inp, a_ref, bn_ref, ind_ref, indt_ref):
        # conv: im2col + weights folded into a_ref -> one lane-dense matmul
        y = jnp.dot(inp, a_ref[...], preferred_element_type=f32)
        bn = bn_ref[...]                             # rows: bias / gamma / beta
        y = y + bn[0:1, :]                           # conv bias (column layout)
        # training-mode BatchNorm, single-pass stats via per-channel 0/1
        # indicator matmuls (no reshapes / strided reductions needed)
        n_per_ch = float(N * (a_ref.shape[1] // ind_ref.shape[1]))
        s1 = jnp.sum(y, axis=0, keepdims=True)
        s2 = jnp.sum(y * y, axis=0, keepdims=True)
        mean_c = jnp.dot(s1, ind_ref[...], preferred_element_type=f32) * (1.0 / n_per_ch)
        ex2_c = jnp.dot(s2, ind_ref[...], preferred_element_type=f32) * (1.0 / n_per_ch)
        scale_c = jax.lax.rsqrt(ex2_c - mean_c * mean_c + BN_EPS)
        mean_cols = jnp.dot(mean_c, indt_ref[...], preferred_element_type=f32)
        scale_cols = jnp.dot(scale_c, indt_ref[...], preferred_element_type=f32)
        out = bn[1:2, :] * ((y - mean_cols) * scale_cols) + bn[2:3, :]
        return jnp.maximum(out, 0.0)

    h1 = conv_bn_relu(x, a1_ref, bn1_ref, c1i_ref, c1it_ref)    # [N, 256]
    h2 = conv_bn_relu(h1, a2_ref, bn2_ref, c2i_ref, c2it_ref)   # [N, T*C*F], cols (t,c,f)

    # ---- GRU (batch_first, h0 = 0). Input->hidden projection hoisted out of
    # the recurrence (block-diagonal Wih); recurrence fully unrolled (T=4).
    H = whh_ref.shape[0]
    THREE_H = whh_ref.shape[1]
    T = bihb_ref.shape[1] // THREE_H
    gi_all = jnp.dot(h2, wihb_ref[...], preferred_element_type=f32) + bihb_ref[...]
    whh = whh_ref[...]
    bhh = bhh_ref[...]
    h = jnp.zeros((N, H), f32)
    for t in range(T):
        gi = gi_all[:, t * THREE_H:(t + 1) * THREE_H]
        gh = jnp.dot(h, whh, preferred_element_type=f32) + bhh
        r = jax.nn.sigmoid(gi[:, :H] + gh[:, :H])
        z = jax.nn.sigmoid(gi[:, H:2 * H] + gh[:, H:2 * H])
        n_g = jnp.tanh(gi[:, 2 * H:] + r * gh[:, 2 * H:])
        h = (1.0 - z) * n_g + z * h

    # ---- Style-token multi-head attention. tanh(embed), W_k/W_v, the
    # 1/sqrt(d_k) scale and the per-head layout are folded into wq/kb/vb, so
    # all heads are two matmuls + a block-masked softmax.
    q = jnp.dot(h, wq_ref[...], preferred_element_type=f32)          # [N, E]
    s = jnp.dot(q, kb_ref[...], preferred_element_type=f32)          # [N, heads*tokens]
    m = jnp.max(s, axis=-1, keepdims=True)                           # shared row max (exact)
    e = jnp.exp(s - m)
    denom = jnp.dot(e, bmask_ref[...], preferred_element_type=f32)   # per-head sums, broadcast
    attn = e / denom
    out_ref[...] = jnp.dot(attn, vb_ref[...], preferred_element_type=f32)  # cols (head, d)


# ------------------------------ JAX wrapper ---------------------------------
def gst_forward(prep, inputs):
    """inputs: [N, Ty, n_mels] -> style embedding [N, 1, token_embedding_size]."""
    N = inputs.shape[0]
    x2d = inputs.reshape(N, -1)                       # [N, Ty*n_mels], free reshape
    out = pl.pallas_call(
        gst_kernel,
        out_shape=jax.ShapeDtypeStruct((N, TOKEN_EMBEDDING_SIZE), jnp.float32),
        cost_estimate=pl.CostEstimate(flops=600_000, transcendentals=2_000,
                                      bytes_accessed=800_000),
        compiler_params=pltpu.CompilerParams(vmem_limit_bytes=8 * 1024 * 1024),
    )(x2d, prep["a1"], prep["bn1"], prep["c1ind"], prep["c1ind_t"],
      prep["a2"], prep["bn2"], prep["c2ind"], prep["c2ind_t"],
      prep["wih_big"], prep["bih_big"], prep["whh"], prep["bhh"],
      prep["wq"], prep["kb"], prep["vb"], prep["bmask"])
    return out[:, None, :]
    # TODO(synk): input_lengths / pack_padded_sequence path not implemented
    # (only the input_lengths=None path of ReferenceEncoder.forward).


# ----------------------- parameter folding (host-side) ----------------------
def _conv_as_matrix(w, in_hw, in_col, out_col, n_in_cols, n_out_cols):
    """3x3 / stride-2 / pad-1 conv (incl. weights) as a dense [in_cols, out_cols] map."""
    c_out, c_in, _, _ = w.shape
    h_in, w_in = in_hw
    oh_n = (h_in + 2 - 3) // 2 + 1
    ow_n = (w_in + 2 - 3) // 2 + 1
    a = np.zeros((n_in_cols, n_out_cols), np.float32)
    for co in range(c_out):
        for oh in range(oh_n):
            for ow in range(ow_n):
                col = out_col(co, oh, ow)
                for ci in range(c_in):
                    for kh in range(3):
                        for kw in range(3):
                            h = 2 * oh + kh - 1
                            ww = 2 * ow + kw - 1
                            if 0 <= h < h_in and 0 <= ww < w_in:
                                a[in_col(ci, h, ww), col] += float(w[co, ci, kh, kw])
    return a


def prepare_params(params, ty):
    """Fold PyTorch-style params into kernel-friendly matrices (done once, eagerly)."""
    (w1, b1, g1, be1), (w2, b2, g2, be2) = [
        tuple(np.asarray(p, np.float32) for p in layer) for layer in params["convs"]]
    wih, whh, bih, bhh = [np.asarray(p, np.float32) for p in params["gru"]]
    embed, wq, wk, wv = [np.asarray(p, np.float32) for p in params["stl"]]

    ih, iw = ty, N_MEL_CHANNELS
    oh1, ow1 = (ih + 2 - 3) // 2 + 1, (iw + 2 - 3) // 2 + 1     # 8, 8
    oh2, ow2 = (oh1 + 2 - 3) // 2 + 1, (ow1 + 2 - 3) // 2 + 1   # 4, 4
    c1, c2 = REF_ENC_FILTERS
    m1 = oh1 * ow1                     # conv1 spatial positions per channel
    cf = c2 * ow2                      # GRU features per timestep (c-major, then f)
    ncols1 = c1 * m1                   # conv1 output columns, ordered (c, oh, ow)
    ncols2 = oh2 * cf                  # conv2 output columns, ordered (t, c, f)

    a1 = _conv_as_matrix(w1, (ih, iw),
                         in_col=lambda ci, h, w: h * iw + w,
                         out_col=lambda co, oh, ow: co * m1 + oh * ow1 + ow,
                         n_in_cols=ih * iw, n_out_cols=ncols1)
    a2 = _conv_as_matrix(w2, (oh1, ow1),
                         in_col=lambda ci, h, w: ci * m1 + h * ow1 + w,
                         out_col=lambda co, oh, ow: oh * cf + co * ow2 + ow,
                         n_in_cols=ncols1, n_out_cols=ncols2)

    # per-column BN params + per-channel indicator matrices (column -> channel)
    ch1 = np.arange(ncols1) // m1
    ch2 = (np.arange(ncols2) % cf) // ow2
    bn1 = np.stack([b1[ch1], g1[ch1], be1[ch1]]).astype(np.float32)     # [3, 256]
    bn2 = np.stack([b2[ch2], g2[ch2], be2[ch2]]).astype(np.float32)     # [3, 128]
    c1ind = (ch1[:, None] == np.arange(c1)[None, :]).astype(np.float32)
    c2ind = (ch2[:, None] == np.arange(c2)[None, :]).astype(np.float32)

    # GRU: block-diagonal Wih so all T input->hidden projections are one matmul
    t_steps, gru_in, hh = oh2, cf, whh.shape[0]
    wih_big = np.zeros((t_steps * gru_in, t_steps * 3 * hh), np.float32)
    for t in range(t_steps):
        wih_big[t * gru_in:(t + 1) * gru_in, t * 3 * hh:(t + 1) * 3 * hh] = wih
    bih_big = np.tile(bih[None, :], (1, t_steps)).astype(np.float32)     # [1, T*3H]

    # STL: fold tanh(embed), K/V projections, scale and per-head block layout
    e_dim = wq.shape[1]
    split = e_dim // NUM_HEADS
    dk = embed.shape[1]
    tk = embed.shape[0]
    keys = np.tanh(embed)                          # [tk, dk]
    k = keys @ wk                                  # [tk, E], cols (head, d)
    v = keys @ wv                                  # [tk, E]
    head_of_feat = np.arange(e_dim) // split
    head_of_tok = np.arange(NUM_HEADS * tk) // tk
    kb = (np.tile(k.T, (1, NUM_HEADS)) *
          (head_of_feat[:, None] == head_of_tok[None, :])).astype(np.float32)
    vb = (np.tile(v, (NUM_HEADS, 1)) *
          (head_of_tok[:, None] == head_of_feat[None, :])).astype(np.float32)
    bmask = (head_of_tok[:, None] == head_of_tok[None, :]).astype(np.float32)
    wq_s = (wq / np.sqrt(dk)).astype(np.float32)   # fold 1/sqrt(d_k) into W_query

    as_j = jnp.asarray
    return {
        "a1": as_j(a1), "bn1": as_j(bn1), "c1ind": as_j(c1ind), "c1ind_t": as_j(c1ind.T),
        "a2": as_j(a2), "bn2": as_j(bn2), "c2ind": as_j(c2ind), "c2ind_t": as_j(c2ind.T),
        "wih_big": as_j(wih_big), "bih_big": as_j(bih_big),
        "whh": as_j(whh), "bhh": as_j(bhh[None, :]),
        "wq": as_j(wq_s), "kb": as_j(kb), "vb": as_j(vb), "bmask": as_j(bmask),
    }


# -------------------------- parameter construction --------------------------
def init_params(key):
    keys = jax.random.split(key, 16)
    ki = iter(keys)

    convs = []
    filters = [1] + REF_ENC_FILTERS
    for i in range(len(REF_ENC_FILTERS)):
        c_in, c_out = filters[i], filters[i + 1]
        w = 0.1 * jax.random.normal(next(ki), (c_out, c_in, 3, 3), jnp.float32)
        b = 0.1 * jax.random.normal(next(ki), (c_out,), jnp.float32)
        gamma = 1.0 + 0.1 * jax.random.normal(next(ki), (c_out,), jnp.float32)
        beta = 0.1 * jax.random.normal(next(ki), (c_out,), jnp.float32)
        convs.append((w, b, gamma, beta))

    L = N_MEL_CHANNELS
    for _ in range(len(REF_ENC_FILTERS)):
        L = (L - 3 + 2) // 2 + 1
    gru_in = REF_ENC_FILTERS[-1] * L
    H = REF_ENC_GRU_SIZE
    # stored as [In, 3H] / [H, 3H] (already transposed vs PyTorch W_ih/W_hh), gate order (r,z,n)
    wih = 0.1 * jax.random.normal(next(ki), (gru_in, 3 * H), jnp.float32)
    whh = 0.1 * jax.random.normal(next(ki), (H, 3 * H), jnp.float32)
    bih = 0.1 * jax.random.normal(next(ki), (3 * H,), jnp.float32)
    bhh = 0.1 * jax.random.normal(next(ki), (3 * H,), jnp.float32)

    d_q = REF_ENC_GRU_SIZE
    d_k = TOKEN_EMBEDDING_SIZE // NUM_HEADS
    E = TOKEN_EMBEDDING_SIZE
    embed = 0.5 * jax.random.normal(next(ki), (TOKEN_NUM, d_k), jnp.float32)
    wq = 0.1 * jax.random.normal(next(ki), (d_q, E), jnp.float32)
    wk = 0.1 * jax.random.normal(next(ki), (d_k, E), jnp.float32)
    wv = 0.1 * jax.random.normal(next(ki), (d_k, E), jnp.float32)

    return {"convs": convs, "gru": (wih, whh, bih, bhh), "stl": (embed, wq, wk, wv)}


# ----------------------------------- main ------------------------------------
if __name__ == "__main__":
    key = jax.random.PRNGKey(0)
    k_params, k_inp = jax.random.split(key)

    params = init_params(k_params)
    # inputs: [N, Ty, n_mels] log-mel-like signal
    inputs = jax.random.normal(k_inp, (2, 16, N_MEL_CHANNELS), jnp.float32)

    prep = prepare_params(params, ty=inputs.shape[1])
    out = jax.jit(gst_forward)(prep, inputs)
    out = jax.block_until_ready(out)

    assert out.shape == (2, 1, TOKEN_EMBEDDING_SIZE), out.shape
    assert out.dtype == jnp.float32
    print("KERNEL_OK")
</pallas_src>

<mosaic_0001>
module attributes {stable_mosaic.version = 11 : i64} {
  func.func @gst_kernel(%arg0: memref<2x256xf32, #tpu.memory_space<vmem>>, %arg1: memref<256x256xf32, #tpu.memory_space<vmem>>, %arg2: memref<3x256xf32, #tpu.memory_space<vmem>>, %arg3: memref<256x4xf32, #tpu.memory_space<vmem>>, %arg4: memref<4x256xf32, #tpu.memory_space<vmem>>, %arg5: memref<256x128xf32, #tpu.memory_space<vmem>>, %arg6: memref<3x128xf32, #tpu.memory_space<vmem>>, %arg7: memref<128x8xf32, #tpu.memory_space<vmem>>, %arg8: memref<8x128xf32, #tpu.memory_space<vmem>>, %arg9: memref<128x384xf32, #tpu.memory_space<vmem>>, %arg10: memref<1x384xf32, #tpu.memory_space<vmem>>, %arg11: memref<32x96xf32, #tpu.memory_space<vmem>>, %arg12: memref<1x96xf32, #tpu.memory_space<vmem>>, %arg13: memref<32x32xf32, #tpu.memory_space<vmem>>, %arg14: memref<32x32xf32, #tpu.memory_space<vmem>>, %arg15: memref<32x32xf32, #tpu.memory_space<vmem>>, %arg16: memref<32x32xf32, #tpu.memory_space<vmem>>, %arg17: memref<2x32xf32, #tpu.memory_space<vmem>>) attributes {dimension_semantics = [], scalar_prefetch = 0 : i64, scratch_operands = 0 : i64, tpu.core_type = #tpu.core_type<tc>} {
    %c0 = arith.constant 0 : index
    %c0_0 = arith.constant 0 : index
    %0 = vector.load %arg0[%c0, %c0_0] : memref<2x256xf32, #tpu.memory_space<vmem>>, vector<2x256xf32>
    %c0_1 = arith.constant 0 : index
    %c0_2 = arith.constant 0 : index
    %1 = vector.load %arg1[%c0_1, %c0_2] : memref<256x256xf32, #tpu.memory_space<vmem>>, vector<256x256xf32>
    %cst = arith.constant dense<0.000000e+00> : vector<2x256xf32>
    %2 = tpu.matmul %0, %1, %cst {dimension_numbers = #tpu.dot_dimension_numbers<[1], [0], [0], [1], [0, 0, 1, 1], [], []>} : vector<2x256xf32>, vector<256x256xf32>, vector<2x256xf32> -> vector<2x256xf32>
    %c0_3 = arith.constant 0 : index
    %c0_4 = arith.constant 0 : index
    %3 = vector.load %arg2[%c0_3, %c0_4] : memref<3x256xf32, #tpu.memory_space<vmem>>, vector<3x256xf32>
    %4 = vector.extract_strided_slice %3 {offsets = [0, 0], sizes = [1, 256], strides = [1, 1]} : vector<3x256xf32> to vector<1x256xf32>
    %5 = vector.broadcast %4 : vector<1x256xf32> to vector<2x256xf32>
    %6 = arith.addf %2, %5 : vector<2x256xf32>
    %cst_5 = arith.constant dense<0.000000e+00> : vector<256xf32>
    %7 = vector.multi_reduction <add>, %6, %cst_5 [0] : vector<2x256xf32> to vector<256xf32>
    %8 = vector.shape_cast %7 : vector<256xf32> to vector<1x256xf32>
    %9 = arith.mulf %6, %6 : vector<2x256xf32>
    %cst_6 = arith.constant dense<0.000000e+00> : vector<256xf32>
    %10 = vector.multi_reduction <add>, %9, %cst_6 [0] : vector<2x256xf32> to vector<256xf32>
    %11 = vector.shape_cast %10 : vector<256xf32> to vector<1x256xf32>
    %c0_7 = arith.constant 0 : index
    %c0_8 = arith.constant 0 : index
    %12 = vector.load %arg3[%c0_7, %c0_8] : memref<256x4xf32, #tpu.memory_space<vmem>>, vector<256x4xf32>
    %cst_9 = arith.constant dense<0.000000e+00> : vector<1x4xf32>
    %13 = tpu.matmul %8, %12, %cst_9 {dimension_numbers = #tpu.dot_dimension_numbers<[1], [0], [0], [1], [0, 0, 1, 1], [], []>} : vector<1x256xf32>, vector<256x4xf32>, vector<1x4xf32> -> vector<1x4xf32>
    %cst_10 = arith.constant 7.812500e-03 : f32
    %14 = vector.broadcast %cst_10 : f32 to vector<1x4xf32>
    %15 = arith.mulf %13, %14 : vector<1x4xf32>
    %c0_11 = arith.constant 0 : index
    %c0_12 = arith.constant 0 : index
    %16 = vector.load %arg3[%c0_11, %c0_12] : memref<256x4xf32, #tpu.memory_space<vmem>>, vector<256x4xf32>
    %cst_13 = arith.constant dense<0.000000e+00> : vector<1x4xf32>
    %17 = tpu.matmul %11, %16, %cst_13 {dimension_numbers = #tpu.dot_dimension_numbers<[1], [0], [0], [1], [0, 0, 1, 1], [], []>} : vector<1x256xf32>, vector<256x4xf32>, vector<1x4xf32> -> vector<1x4xf32>
    %cst_14 = arith.constant 7.812500e-03 : f32
    %18 = vector.broadcast %cst_14 : f32 to vector<1x4xf32>
    %19 = arith.mulf %17, %18 : vector<1x4xf32>
    %20 = arith.mulf %15, %15 : vector<1x4xf32>
    %21 = arith.subf %19, %20 : vector<1x4xf32>
    %cst_15 = arith.constant 9.99999974E-6 : f32
    %22 = vector.broadcast %cst_15 : f32 to vector<1x4xf32>
    %23 = arith.addf %21, %22 : vector<1x4xf32>
    %24 = math.rsqrt %23 : vector<1x4xf32>
    %c0_16 = arith.constant 0 : index
    %c0_17 = arith.constant 0 : index
    %25 = vector.load %arg4[%c0_16, %c0_17] : memref<4x256xf32, #tpu.memory_space<vmem>>, vector<4x256xf32>
    %cst_18 = arith.constant dense<0.000000e+00> : vector<1x256xf32>
    %26 = tpu.matmul %15, %25, %cst_18 {dimension_numbers = #tpu.dot_dimension_numbers<[1], [0], [0], [1], [0, 0, 1, 1], [], []>} : vector<1x4xf32>, vector<4x256xf32>, vector<1x256xf32> -> vector<1x256xf32>
    %c0_19 = arith.constant 0 : index
    %c0_20 = arith.constant 0 : index
    %27 = vector.load %arg4[%c0_19, %c0_20] : memref<4x256xf32, #tpu.memory_space<vmem>>, vector<4x256xf32>
    %cst_21 = arith.constant dense<0.000000e+00> : vector<1x256xf32>
    %28 = tpu.matmul %24, %27, %cst_21 {dimension_numbers = #tpu.dot_dimension_numbers<[1], [0], [0], [1], [0, 0, 1, 1], [], []>} : vector<1x4xf32>, vector<4x256xf32>, vector<1x256xf32> -> vector<1x256xf32>
    %29 = vector.extract_strided_slice %3 {offsets = [1, 0], sizes = [1, 256], strides = [1, 1]} : vector<3x256xf32> to vector<1x256xf32>
    %30 = vector.broadcast %26 : vector<1x256xf32> to vector<2x256xf32>
    %31 = arith.subf %6, %30 : vector<2x256xf32>
    %32 = vector.broadcast %28 : vector<1x256xf32> to vector<2x256xf32>
    %33 = arith.mulf %31, %32 : vector<2x256xf32>
    %34 = vector.broadcast %29 : vector<1x256xf32> to vector<2x256xf32>
    %35 = arith.mulf %34, %33 : vector<2x256xf32>
    %36 = vector.extract_strided_slice %3 {offsets = [2, 0], sizes = [1, 256], strides = [1, 1]} : vector<3x256xf32> to vector<1x256xf32>
    %37 = vector.broadcast %36 : vector<1x256xf32> to vector<2x256xf32>
    %38 = arith.addf %35, %37 : vector<2x256xf32>
    %cst_22 = arith.constant 0.000000e+00 : f32
    %39 = vector.broadcast %cst_22 : f32 to vector<2x256xf32>
    %40 = arith.maximumf %38, %39 : vector<2x256xf32>
    %c0_23 = arith.constant 0 : index
    %c0_24 = arith.constant 0 : index
    %41 = vector.load %arg5[%c0_23, %c0_24] : memref<256x128xf32, #tpu.memory_space<vmem>>, vector<256x128xf32>
    %cst_25 = arith.constant dense<0.000000e+00> : vector<2x128xf32>
    %42 = tpu.matmul %40, %41, %cst_25 {dimension_numbers = #tpu.dot_dimension_numbers<[1], [0], [0], [1], [0, 0, 1, 1], [], []>} : vector<2x256xf32>, vector<256x128xf32>, vector<2x128xf32> -> vector<2x128xf32>
    %c0_26 = arith.constant 0 : index
    %c0_27 = arith.constant 0 : index
    %43 = vector.load %arg6[%c0_26, %c0_27] : memref<3x128xf32, #tpu.memory_space<vmem>>, vector<3x128xf32>
    %44 = vector.extract_strided_slice %43 {offsets = [0, 0], sizes = [1, 128], strides = [1, 1]} : vector<3x128xf32> to vector<1x128xf32>
    %45 = vector.broadcast %44 : vector<1x128xf32> to vector<2x128xf32>
    %46 = arith.addf %42, %45 : vector<2x128xf32>
    %cst_28 = arith.constant dense<0.000000e+00> : vector<128xf32>
    %47 = vector.multi_reduction <add>, %46, %cst_28 [0] : vector<2x128xf32> to vector<128xf32>
    %48 = vector.shape_cast %47 : vector<128xf32> to vector<1x128xf32>
    %49 = arith.mulf %46, %46 : vector<2x128xf32>
    %cst_29 = arith.constant dense<0.000000e+00> : vector<128xf32>
    %50 = vector.multi_reduction <add>, %49, %cst_29 [0] : vector<2x128xf32> to vector<128xf32>
    %51 = vector.shape_cast %50 : vector<128xf32> to vector<1x128xf32>
    %c0_30 = arith.constant 0 : index
    %c0_31 = arith.constant 0 : index
    %52 = vector.load %arg7[%c0_30, %c0_31] : memref<128x8xf32, #tpu.memory_space<vmem>>, vector<128x8xf32>
    %cst_32 = arith.constant dense<0.000000e+00> : vector<1x8xf32>
    %53 = tpu.matmul %48, %52, %cst_32 {dimension_numbers = #tpu.dot_dimension_numbers<[1], [0], [0], [1], [0, 0, 1, 1], [], []>} : vector<1x128xf32>, vector<128x8xf32>, vector<1x8xf32> -> vector<1x8xf32>
    %cst_33 = arith.constant 3.125000e-02 : f32
    %54 = vector.broadcast %cst_33 : f32 to vector<1x8xf32>
    %55 = arith.mulf %53, %54 : vector<1x8xf32>
    %c0_34 = arith.constant 0 : index
    %c0_35 = arith.constant 0 : index
    %56 = vector.load %arg7[%c0_34, %c0_35] : memref<128x8xf32, #tpu.memory_space<vmem>>, vector<128x8xf32>
    %cst_36 = arith.constant dense<0.000000e+00> : vector<1x8xf32>
    %57 = tpu.matmul %51, %56, %cst_36 {dimension_numbers = #tpu.dot_dimension_numbers<[1], [0], [0], [1], [0, 0, 1, 1], [], []>} : vector<1x128xf32>, vector<128x8xf32>, vector<1x8xf32> -> vector<1x8xf32>
    %cst_37 = arith.constant 3.125000e-02 : f32
    %58 = vector.broadcast %cst_37 : f32 to vector<1x8xf32>
    %59 = arith.mulf %57, %58 : vector<1x8xf32>
    %60 = arith.mulf %55, %55 : vector<1x8xf32>
    %61 = arith.subf %59, %60 : vector<1x8xf32>
    %cst_38 = arith.constant 9.99999974E-6 : f32
    %62 = vector.broadcast %cst_38 : f32 to vector<1x8xf32>
    %63 = arith.addf %61, %62 : vector<1x8xf32>
    %64 = math.rsqrt %63 : vector<1x8xf32>
    %c0_39 = arith.constant 0 : index
    %c0_40 = arith.constant 0 : index
    %65 = vector.load %arg8[%c0_39, %c0_40] : memref<8x128xf32, #tpu.memory_space<vmem>>, vector<8x128xf32>
    %cst_41 = arith.constant dense<0.000000e+00> : vector<1x128xf32>
    %66 = tpu.matmul %55, %65, %cst_41 {dimension_numbers = #tpu.dot_dimension_numbers<[1], [0], [0], [1], [0, 0, 1, 1], [], []>} : vector<1x8xf32>, vector<8x128xf32>, vector<1x128xf32> -> vector<1x128xf32>
    %c0_42 = arith.constant 0 : index
    %c0_43 = arith.constant 0 : index
    %67 = vector.load %arg8[%c0_42, %c0_43] : memref<8x128xf32, #tpu.memory_space<vmem>>, vector<8x128xf32>
    %cst_44 = arith.constant dense<0.000000e+00> : vector<1x128xf32>
    %68 = tpu.matmul %64, %67, %cst_44 {dimension_numbers = #tpu.dot_dimension_numbers<[1], [0], [0], [1], [0, 0, 1, 1], [], []>} : vector<1x8xf32>, vector<8x128xf32>, vector<1x128xf32> -> vector<1x128xf32>
    %69 = vector.extract_strided_slice %43 {offsets = [1, 0], sizes = [1, 128], strides = [1, 1]} : vector<3x128xf32> to vector<1x128xf32>
    %70 = vector.broadcast %66 : vector<1x128xf32> to vector<2x128xf32>
    %71 = arith.subf %46, %70 : vector<2x128xf32>
    %72 = vector.broadcast %68 : vector<1x128xf32> to vector<2x128xf32>
    %73 = arith.mulf %71, %72 : vector<2x128xf32>
    %74 = vector.broadcast %69 : vector<1x128xf32> to vector<2x128xf32>
    %75 = arith.mulf %74, %73 : vector<2x128xf32>
    %76 = vector.extract_strided_slice %43 {offsets = [2, 0], sizes = [1, 128], strides = [1, 1]} : vector<3x128xf32> to vector<1x128xf32>
    %77 = vector.broadcast %76 : vector<1x128xf32> to vector<2x128xf32>
    %78 = arith.addf %75, %77 : vector<2x128xf32>
    %cst_45 = arith.constant 0.000000e+00 : f32
    %79 = vector.broadcast %cst_45 : f32 to vector<2x128xf32>
    %80 = arith.maximumf %78, %79 : vector<2x128xf32>
    %c0_46 = arith.constant 0 : index
    %c0_47 = arith.constant 0 : index
    %81 = vector.load %arg9[%c0_46, %c0_47] : memref<128x384xf32, #tpu.memory_space<vmem>>, vector<128x384xf32>
    %cst_48 = arith.constant dense<0.000000e+00> : vector<2x384xf32>
    %82 = tpu.matmul %80, %81, %cst_48 {dimension_numbers = #tpu.dot_dimension_numbers<[1], [0], [0], [1], [0, 0, 1, 1], [], []>} : vector<2x128xf32>, vector<128x384xf32>, vector<2x384xf32> -> vector<2x384xf32>
    %c0_49 = arith.constant 0 : index
    %c0_50 = arith.constant 0 : index
    %83 = vector.load %arg10[%c0_49, %c0_50] : memref<1x384xf32, #tpu.memory_space<vmem>>, vector<1x384xf32>
    %84 = vector.broadcast %83 : vector<1x384xf32> to vector<2x384xf32>
    %85 = arith.addf %82, %84 : vector<2x384xf32>
    %c0_51 = arith.constant 0 : index
    %c0_52 = arith.constant 0 : index
    %86 = vector.load %arg11[%c0_51, %c0_52] : memref<32x96xf32, #tpu.memory_space<vmem>>, vector<32x96xf32>
    %c0_53 = arith.constant 0 : index
    %c0_54 = arith.constant 0 : index
    %87 = vector.load %arg12[%c0_53, %c0_54] : memref<1x96xf32, #tpu.memory_space<vmem>>, vector<1x96xf32>
    %cst_55 = arith.constant 0.000000e+00 : f32
    %88 = vector.broadcast %cst_55 : f32 to vector<2x32xf32>
    %89 = vector.extract_strided_slice %85 {offsets = [0, 0], sizes = [2, 96], strides = [1, 1]} : vector<2x384xf32> to vector<2x96xf32>
    %cst_56 = arith.constant dense<0.000000e+00> : vector<2x96xf32>
    %90 = tpu.matmul %88, %86, %cst_56 {dimension_numbers = #tpu.dot_dimension_numbers<[1], [0], [0], [1], [0, 0, 1, 1], [], []>} : vector<2x32xf32>, vector<32x96xf32>, vector<2x96xf32> -> vector<2x96xf32>
    %91 = vector.broadcast %87 : vector<1x96xf32> to vector<2x96xf32>
    %92 = arith.addf %90, %91 : vector<2x96xf32>
    %93 = vector.extract_strided_slice %89 {offsets = [0, 0], sizes = [2, 32], strides = [1, 1]} : vector<2x96xf32> to vector<2x32xf32>
    %94 = vector.extract_strided_slice %92 {offsets = [0, 0], sizes = [2, 32], strides = [1, 1]} : vector<2x96xf32> to vector<2x32xf32>
    %95 = arith.addf %93, %94 : vector<2x32xf32>
    %96 = arith.negf %95 : vector<2x32xf32>
    %97 = math.exp %96 : vector<2x32xf32>
    %cst_57 = arith.constant 1.000000e+00 : f32
    %98 = vector.broadcast %cst_57 : f32 to vector<2x32xf32>
    %99 = arith.addf %98, %97 : vector<2x32xf32>
    %100 = arith.divf %98, %99 : vector<2x32xf32>
    %101 = vector.extract_strided_slice %89 {offsets = [0, 32], sizes = [2, 32], strides = [1, 1]} : vector<2x96xf32> to vector<2x32xf32>
    %102 = vector.extract_strided_slice %92 {offsets = [0, 32], sizes = [2, 32], strides = [1, 1]} : vector<2x96xf32> to vector<2x32xf32>
    %103 = arith.addf %101, %102 : vector<2x32xf32>
    %104 = arith.negf %103 : vector<2x32xf32>
    %105 = math.exp %104 : vector<2x32xf32>
    %cst_58 = arith.constant 1.000000e+00 : f32
    %106 = vector.broadcast %cst_58 : f32 to vector<2x32xf32>
    %107 = arith.addf %106, %105 : vector<2x32xf32>
    %108 = arith.divf %106, %107 : vector<2x32xf32>
    %109 = vector.extract_strided_slice %89 {offsets = [0, 64], sizes = [2, 32], strides = [1, 1]} : vector<2x96xf32> to vector<2x32xf32>
    %110 = vector.extract_strided_slice %92 {offsets = [0, 64], sizes = [2, 32], strides = [1, 1]} : vector<2x96xf32> to vector<2x32xf32>
    %111 = arith.mulf %100, %110 : vector<2x32xf32>
    %112 = arith.addf %109, %111 : vector<2x32xf32>
    %113 = math.tanh %112 : vector<2x32xf32>
    %cst_59 = arith.constant 1.000000e+00 : f32
    %114 = vector.broadcast %cst_59 : f32 to vector<2x32xf32>
    %115 = arith.subf %114, %108 : vector<2x32xf32>
    %116 = arith.mulf %115, %113 : vector<2x32xf32>
    %117 = arith.mulf %108, %88 : vector<2x32xf32>
    %118 = arith.addf %116, %117 : vector<2x32xf32>
    %119 = vector.extract_strided_slice %85 {offsets = [0, 96], sizes = [2, 96], strides = [1, 1]} : vector<2x384xf32> to vector<2x96xf32>
    %cst_60 = arith.constant dense<0.000000e+00> : vector<2x96xf32>
    %120 = tpu.matmul %118, %86, %cst_60 {dimension_numbers = #tpu.dot_dimension_numbers<[1], [0], [0], [1], [0, 0, 1, 1], [], []>} : vector<2x32xf32>, vector<32x96xf32>, vector<2x96xf32> -> vector<2x96xf32>
    %121 = vector.broadcast %87 : vector<1x96xf32> to vector<2x96xf32>
    %122 = arith.addf %120, %121 : vector<2x96xf32>
    %123 = vector.extract_strided_slice %119 {offsets = [0, 0], sizes = [2, 32], strides = [1, 1]} : vector<2x96xf32> to vector<2x32xf32>
    %124 = vector.extract_strided_slice %122 {offsets = [0, 0], sizes = [2, 32], strides = [1, 1]} : vector<2x96xf32> to vector<2x32xf32>
    %125 = arith.addf %123, %124 : vector<2x32xf32>
    %126 = arith.negf %125 : vector<2x32xf32>
    %127 = math.exp %126 : vector<2x32xf32>
    %cst_61 = arith.constant 1.000000e+00 : f32
    %128 = vector.broadcast %cst_61 : f32 to vector<2x32xf32>
    %129 = arith.addf %128, %127 : vector<2x32xf32>
    %130 = arith.divf %128, %129 : vector<2x32xf32>
    %131 = vector.extract_strided_slice %119 {offsets = [0, 32], sizes = [2, 32], strides = [1, 1]} : vector<2x96xf32> to vector<2x32xf32>
    %132 = vector.extract_strided_slice %122 {offsets = [0, 32], sizes = [2, 32], strides = [1, 1]} : vector<2x96xf32> to vector<2x32xf32>
    %133 = arith.addf %131, %132 : vector<2x32xf32>
    %134 = arith.negf %133 : vector<2x32xf32>
    %135 = math.exp %134 : vector<2x32xf32>
    %cst_62 = arith.constant 1.000000e+00 : f32
    %136 = vector.broadcast %cst_62 : f32 to vector<2x32xf32>
    %137 = arith.addf %136, %135 : vector<2x32xf32>
    %138 = arith.divf %136, %137 : vector<2x32xf32>
    %139 = vector.extract_strided_slice %119 {offsets = [0, 64], sizes = [2, 32], strides = [1, 1]} : vector<2x96xf32> to vector<2x32xf32>
    %140 = vector.extract_strided_slice %122 {offsets = [0, 64], sizes = [2, 32], strides = [1, 1]} : vector<2x96xf32> to vector<2x32xf32>
    %141 = arith.mulf %130, %140 : vector<2x32xf32>
    %142 = arith.addf %139, %141 : vector<2x32xf32>
    %143 = math.tanh %142 : vector<2x32xf32>
    %cst_63 = arith.constant 1.000000e+00 : f32
    %144 = vector.broadcast %cst_63 : f32 to vector<2x32xf32>
    %145 = arith.subf %144, %138 : vector<2x32xf32>
    %146 = arith.mulf %145, %143 : vector<2x32xf32>
    %147 = arith.mulf %138, %118 : vector<2x32xf32>
    %148 = arith.addf %146, %147 : vector<2x32xf32>
    %149 = vector.extract_strided_slice %85 {offsets = [0, 192], sizes = [2, 96], strides = [1, 1]} : vector<2x384xf32> to vector<2x96xf32>
    %cst_64 = arith.constant dense<0.000000e+00> : vector<2x96xf32>
    %150 = tpu.matmul %148, %86, %cst_64 {dimension_numbers = #tpu.dot_dimension_numbers<[1], [0], [0], [1], [0, 0, 1, 1], [], []>} : vector<2x32xf32>, vector<32x96xf32>, vector<2x96xf32> -> vector<2x96xf32>
    %151 = vector.broadcast %87 : vector<1x96xf32> to vector<2x96xf32>
    %152 = arith.addf %150, %151 : vector<2x96xf32>
    %153 = vector.extract_strided_slice %149 {offsets = [0, 0], sizes = [2, 32], strides = [1, 1]} : vector<2x96xf32> to vector<2x32xf32>
    %154 = vector.extract_strided_slice %152 {offsets = [0, 0], sizes = [2, 32], strides = [1, 1]} : vector<2x96xf32> to vector<2x32xf32>
    %155 = arith.addf %153, %154 : vector<2x32xf32>
    %156 = arith.negf %155 : vector<2x32xf32>
    %157 = math.exp %156 : vector<2x32xf32>
    %cst_65 = arith.constant 1.000000e+00 : f32
    %158 = vector.broadcast %cst_65 : f32 to vector<2x32xf32>
    %159 = arith.addf %158, %157 : vector<2x32xf32>
    %160 = arith.divf %158, %159 : vector<2x32xf32>
    %161 = vector.extract_strided_slice %149 {offsets = [0, 32], sizes = [2, 32], strides = [1, 1]} : vector<2x96xf32> to vector<2x32xf32>
    %162 = vector.extract_strided_slice %152 {offsets = [0, 32], sizes = [2, 32], strides = [1, 1]} : vector<2x96xf32> to vector<2x32xf32>
    %163 = arith.addf %161, %162 : vector<2x32xf32>
    %164 = arith.negf %163 : vector<2x32xf32>
    %165 = math.exp %164 : vector<2x32xf32>
    %cst_66 = arith.constant 1.000000e+00 : f32
    %166 = vector.broadcast %cst_66 : f32 to vector<2x32xf32>
    %167 = arith.addf %166, %165 : vector<2x32xf32>
    %168 = arith.divf %166, %167 : vector<2x32xf32>
    %169 = vector.extract_strided_slice %149 {offsets = [0, 64], sizes = [2, 32], strides = [1, 1]} : vector<2x96xf32> to vector<2x32xf32>
    %170 = vector.extract_strided_slice %152 {offsets = [0, 64], sizes = [2, 32], strides = [1, 1]} : vector<2x96xf32> to vector<2x32xf32>
    %171 = arith.mulf %160, %170 : vector<2x32xf32>
    %172 = arith.addf %169, %171 : vector<2x32xf32>
    %173 = math.tanh %172 : vector<2x32xf32>
    %cst_67 = arith.constant 1.000000e+00 : f32
    %174 = vector.broadcast %cst_67 : f32 to vector<2x32xf32>
    %175 = arith.subf %174, %168 : vector<2x32xf32>
    %176 = arith.mulf %175, %173 : vector<2x32xf32>
    %177 = arith.mulf %168, %148 : vector<2x32xf32>
    %178 = arith.addf %176, %177 : vector<2x32xf32>
    %179 = vector.extract_strided_slice %85 {offsets = [0, 288], sizes = [2, 96], strides = [1, 1]} : vector<2x384xf32> to vector<2x96xf32>
    %cst_68 = arith.constant dense<0.000000e+00> : vector<2x96xf32>
    %180 = tpu.matmul %178, %86, %cst_68 {dimension_numbers = #tpu.dot_dimension_numbers<[1], [0], [0], [1], [0, 0, 1, 1], [], []>} : vector<2x32xf32>, vector<32x96xf32>, vector<2x96xf32> -> vector<2x96xf32>
    %181 = vector.broadcast %87 : vector<1x96xf32> to vector<2x96xf32>
    %182 = arith.addf %180, %181 : vector<2x96xf32>
    %183 = vector.extract_strided_slice %179 {offsets = [0, 0], sizes = [2, 32], strides = [1, 1]} : vector<2x96xf32> to vector<2x32xf32>
    %184 = vector.extract_strided_slice %182 {offsets = [0, 0], sizes = [2, 32], strides = [1, 1]} : vector<2x96xf32> to vector<2x32xf32>
    %185 = arith.addf %183, %184 : vector<2x32xf32>
    %186 = arith.negf %185 : vector<2x32xf32>
    %187 = math.exp %186 : vector<2x32xf32>
    %cst_69 = arith.constant 1.000000e+00 : f32
    %188 = vector.broadcast %cst_69 : f32 to vector<2x32xf32>
    %189 = arith.addf %188, %187 : vector<2x32xf32>
    %190 = arith.divf %188, %189 : vector<2x32xf32>
    %191 = vector.extract_strided_slice %179 {offsets = [0, 32], sizes = [2, 32], strides = [1, 1]} : vector<2x96xf32> to vector<2x32xf32>
    %192 = vector.extract_strided_slice %182 {offsets = [0, 32], sizes = [2, 32], strides = [1, 1]} : vector<2x96xf32> to vector<2x32xf32>
    %193 = arith.addf %191, %192 : vector<2x32xf32>
    %194 = arith.negf %193 : vector<2x32xf32>
    %195 = math.exp %194 : vector<2x32xf32>
    %cst_70 = arith.constant 1.000000e+00 : f32
    %196 = vector.broadcast %cst_70 : f32 to vector<2x32xf32>
    %197 = arith.addf %196, %195 : vector<2x32xf32>
    %198 = arith.divf %196, %197 : vector<2x32xf32>
    %199 = vector.extract_strided_slice %179 {offsets = [0, 64], sizes = [2, 32], strides = [1, 1]} : vector<2x96xf32> to vector<2x32xf32>
    %200 = vector.extract_strided_slice %182 {offsets = [0, 64], sizes = [2, 32], strides = [1, 1]} : vector<2x96xf32> to vector<2x32xf32>
    %201 = arith.mulf %190, %200 : vector<2x32xf32>
    %202 = arith.addf %199, %201 : vector<2x32xf32>
    %203 = math.tanh %202 : vector<2x32xf32>
    %cst_71 = arith.constant 1.000000e+00 : f32
    %204 = vector.broadcast %cst_71 : f32 to vector<2x32xf32>
    %205 = arith.subf %204, %198 : vector<2x32xf32>
    %206 = arith.mulf %205, %203 : vector<2x32xf32>
    %207 = arith.mulf %198, %178 : vector<2x32xf32>
    %208 = arith.addf %206, %207 : vector<2x32xf32>
    %c0_72 = arith.constant 0 : index
    %c0_73 = arith.constant 0 : index
    %209 = vector.load %arg13[%c0_72, %c0_73] : memref<32x32xf32, #tpu.memory_space<vmem>>, vector<32x32xf32>
    %cst_74 = arith.constant dense<0.000000e+00> : vector<2x32xf32>
    %210 = tpu.matmul %208, %209, %cst_74 {dimension_numbers = #tpu.dot_dimension_numbers<[1], [0], [0], [1], [0, 0, 1, 1], [], []>} : vector<2x32xf32>, vector<32x32xf32>, vector<2x32xf32> -> vector<2x32xf32>
    %c0_75 = arith.constant 0 : index
    %c0_76 = arith.constant 0 : index
    %211 = vector.load %arg14[%c0_75, %c0_76] : memref<32x32xf32, #tpu.memory_space<vmem>>, vector<32x32xf32>
    %cst_77 = arith.constant dense<0.000000e+00> : vector<2x32xf32>
    %212 = tpu.matmul %210, %211, %cst_77 {dimension_numbers = #tpu.dot_dimension_numbers<[1], [0], [0], [1], [0, 0, 1, 1], [], []>} : vector<2x32xf32>, vector<32x32xf32>, vector<2x32xf32> -> vector<2x32xf32>
    %cst_78 = arith.constant dense<0xFF800000> : vector<2xf32>
    %213 = vector.multi_reduction <maximumf>, %212, %cst_78 [1] : vector<2x32xf32> to vector<2xf32>
    %214 = vector.shape_cast %213 : vector<2xf32> to vector<2x1xf32>
    %215 = vector.broadcast %214 : vector<2x1xf32> to vector<2x32xf32>
    %216 = arith.subf %212, %215 : vector<2x32xf32>
    %217 = math.exp %216 : vector<2x32xf32>
    %c0_79 = arith.constant 0 : index
    %c0_80 = arith.constant 0 : index
    %218 = vector.load %arg16[%c0_79, %c0_80] : memref<32x32xf32, #tpu.memory_space<vmem>>, vector<32x32xf32>
    %cst_81 = arith.constant dense<0.000000e+00> : vector<2x32xf32>
    %219 = tpu.matmul %217, %218, %cst_81 {dimension_numbers = #tpu.dot_dimension_numbers<[1], [0], [0], [1], [0, 0, 1, 1], [], []>} : vector<2x32xf32>, vector<32x32xf32>, vector<2x32xf32> -> vector<2x32xf32>
    %220 = arith.divf %217, %219 : vector<2x32xf32>
    %c0_82 = arith.constant 0 : index
    %c0_83 = arith.constant 0 : index
    %221 = vector.load %arg15[%c0_82, %c0_83] : memref<32x32xf32, #tpu.memory_space<vmem>>, vector<32x32xf32>
    %cst_84 = arith.constant dense<0.000000e+00> : vector<2x32xf32>
    %222 = tpu.matmul %220, %221, %cst_84 {dimension_numbers = #tpu.dot_dimension_numbers<[1], [0], [0], [1], [0, 0, 1, 1], [], []>} : vector<2x32xf32>, vector<32x32xf32>, vector<2x32xf32> -> vector<2x32xf32>
    %c0_85 = arith.constant 0 : index
    %c0_86 = arith.constant 0 : index
    %223 = vector.load %arg17[%c0_85, %c0_86] : memref<2x32xf32, #tpu.memory_space<vmem>>, vector<2x32xf32>
    tpu.vector_store %arg17[%c0_85, %c0_86], %222 {strides = array<i32>} : memref<2x32xf32, #tpu.memory_space<vmem>>, vector<2x32xf32>,
    return
  }
}

</mosaic_0001>

<bundles_post_ra>
// kernel: gst_forward.1
= control target key start
LH: loop header
LB: loop body
LE: loop exit
PB: predicated region body
PF: predicated region fallthrough
CT: control target
= control target key end

     0   :  { %s4046_s0 = inlined_call_operand.vmem [shape: f32[2,256], index: 0, kind: input, shape index: {}]   ;;  %s4047_s1 = inlined_call_operand.hbm [shape: f32[256,256], index: 1, kind: input, shape index: {}]   ;;  %s4048_s2 = inlined_call_operand.vmem [shape: f32[3,256], index: 2, kind: input, shape index: {}]   ;;  %s4049_s3 = inlined_call_operand.vmem [shape: f32[256,4], index: 3, kind: input, shape index: {}]   ;;  %s4050_s4 = inlined_call_operand.hbm [shape: f32[4,256], index: 4, kind: input, shape index: {}]   ;;  %s4051_s5 = inlined_call_operand.hbm [shape: f32[256,128], index: 5, kind: input, shape index: {}]   ;;  %s4052_s6 = inlined_call_operand.hbm [shape: f32[3,128], index: 6, kind: input, shape index: {}]   ;;  %s4053_s7 = inlined_call_operand.vmem [shape: f32[128,8], index: 7, kind: input, shape index: {}]   ;;  %s4054_s8 = inlined_call_operand.hbm [shape: f32[8,128], index: 8, kind: input, shape index: {}]   ;;  %s4055_s9 = inlined_call_operand.vmem [shape: f32[128,384], index: 9, kind: input, shape index: {}]   ;;  %s4056_s10 = inlined_call_operand.hbm [shape: f32[1,384], index: 10, kind: input, shape index: {}]   ;;  %s4057_s11 = inlined_call_operand.vmem [shape: f32[32,96], index: 11, kind: input, shape index: {}]   ;;  %s4058_s12 = inlined_call_operand.hbm [shape: f32[1,96], index: 12, kind: input, shape index: {}]   ;;  %s4059_s13 = inlined_call_operand.vmem [shape: f32[32,32], index: 13, kind: input, shape index: {}]   ;;  %s4060_s14 = inlined_call_operand.vmem [shape: f32[32,32], index: 14, kind: input, shape index: {}]   ;;  %s4061_s15 = inlined_call_operand.hbm [shape: f32[32,32], index: 15, kind: input, shape index: {}]   ;;  %s4062_s16 = inlined_call_operand.hbm [shape: f32[32,32], index: 16, kind: input, shape index: {}]   ;;  %s4063_s17 = inlined_call_operand.hbm [shape: f32[2,32], index: 17, kind: output, shape index: {}]  }
   0x1   :  { %4065 = sst [smem:[#allocation24_spill]] %s4046_s0 }
   0x2   :  { %4066 = sst [smem:[#allocation25_spill]] %s4047_s1 }
   0x3   :  { %22 = vsyncpa [#allocation3], 0 }
   0x4   :  { %23 = vsyncpa [#allocation6], 0 }
   0x5   :  { %24 = vsyncpa [#allocation9], 0 }
   0x6   :  { %25 = vsyncpa [#allocation12], 0 }
   0x7   :  { %26 = vsyncpa [#allocation15], 0 }
   0x8   :  { %27 = vsyncpa [#allocation4], 0  ;;  %s3220_s24 = smov [#allocation5]   ;;  %s3221_s26 = smov [#allocation8]  }
   0x9   :  { %s52_s25 = sshll.u32 %s3220_s24, 4  ;;  %s74_s27 = sshll.u32 %s3221_s26, 4  ;;  %s53_s25 = int_to_ptr.vmem [resolvable:$true] %s52_s25  ;;  %s75_s27 = int_to_ptr.vmem [resolvable:$true] %s74_s27 }
   0xa   :  { %s2988_s0 = scalar_lea.hbm %s4050_s4, 128 }
   0xb   :  { %p2989_p0 = scmp.ne.s32.totalorder %s4050_s4, %s2988_s0  ;;  %p2992_p1 = scmp.lt.u32.totalorder %s2988_s0, %s4050_s4 }
   0xd   :  { %p2994_p2 = pnand %p2992_p1, %p2989_p0 }
   0xf   :  { %2997 = shalt.err (!%p2994_p2)
}
  0x10   :  { %s2998_s20 = scalar_lea.vmem %s53_s25, 128  ;;  %p3003_p4 = scmp.lt.s32.totalorder %s53_s25, %s53_s25 }
  0x11   :  { %p2999_p3 = scmp.ne.s32.totalorder %s53_s25, %s2998_s20  ;;  %p3004_p5 = scmp.lt.s32.totalorder %s2998_s20, %s2998_s20 }
  0x13   :  { %p3005_p6 = por %p3004_p5, %p3003_p4 }
  0x15   :  { %p3006_p7 = pnand %p3005_p6, %p2999_p3 }
  0x17   :  { %3009 = shalt.err (!%p3006_p7)
}
  0x18   :  { %55 = dma.hbm_to_vmem [thread:$0]  %s4050_s4, 128, %s53_s25, [#allocation6]  }
  0x19   :  { %s3010_s26 = scalar_lea.hbm %s4052_s6, 64 }
  0x1a   :  { %p3011_p8 = scmp.ne.s32.totalorder %s4052_s6, %s3010_s26  ;;  %p3014_p9 = scmp.lt.u32.totalorder %s3010_s26, %s4052_s6 }
  0x1c   :  { %p3016_p10 = pnand %p3014_p9, %p3011_p8 }
  0x1e   :  { %3019 = shalt.err (!%p3016_p10)
}
  0x1f   :  { %s3020_s18 = scalar_lea.vmem %s75_s27, 64  ;;  %p3025_p12 = scmp.lt.s32.totalorder %s75_s27, %s75_s27 }
  0x20   :  { %p3021_p11 = scmp.ne.s32.totalorder %s75_s27, %s3020_s18  ;;  %p3026_p13 = scmp.lt.s32.totalorder %s3020_s18, %s3020_s18 }
  0x22   :  { %p3027_p0 = por %p3026_p13, %p3025_p12 }
  0x24   :  { %p3028_p1 = pnand %p3027_p0, %p3021_p11 }
  0x26   :  { %3031 = shalt.err (!%p3028_p1)
}
  0x27   :  { %77 = dma.hbm_to_vmem [thread:$0]  %s4052_s6, 64, %s75_s27, [#allocation9]  }
  0x28   :  { %s3222_s19 = smov [#allocation11]   ;;  %s3032_s22 = scalar_lea.hbm %s4056_s10, 48 }
  0x29   :  { %s98_s1 = sshll.u32 %s3222_s19, 4  ;;  %p3033_p2 = scmp.ne.s32.totalorder %s4056_s10, %s3032_s22  ;;  %s99_s1 = int_to_ptr.vmem [resolvable:$true] %s98_s1 }
  0x2a   :  { %p3036_p3 = scmp.lt.u32.totalorder %s3032_s22, %s4056_s10 }
  0x2c   :  { %p3038_p4 = pnand %p3036_p3, %p3033_p2 }
  0x2e   :  { %3041 = shalt.err (!%p3038_p4)
}
  0x2f   :  { %s3042_s29 = scalar_lea.vmem %s99_s1, 48  ;;  %s3046_s6 = scalar_lea.vmem %s99_s1, 64 }
  0x30   :  { %p3043_p5 = scmp.ne.s32.totalorder %s99_s1, %s3042_s29  ;;  %p3047_p6 = scmp.lt.s32.totalorder %s99_s1, %s99_s1 }
  0x31   :  { %p3048_p7 = scmp.lt.s32.totalorder %s3046_s6, %s3042_s29 }
  0x33   :  { %p3049_p8 = por %p3048_p7, %p3047_p6 }
  0x35   :  { %p3050_p9 = pnand %p3049_p8, %p3043_p5 }
  0x37   :  { %3053 = shalt.err (!%p3050_p9)
}
  0x38   :  { %101 = dma.hbm_to_vmem [thread:$0]  %s4056_s10, 48, %s99_s1, [#allocation12]  }
  0x39   :  { %s3223_s30 = smov [#allocation14]   ;;  %s3224_s4 = smov [#allocation2]  }
  0x3a   :  { %s123_s18 = sshll.u32 %s3223_s30, 4  ;;  %s35_s25 = sshll.u32 %s3224_s4, 4  ;;  %s124_s18 = int_to_ptr.vmem [resolvable:$true] %s123_s18  ;;  %s36_s25 = int_to_ptr.vmem [resolvable:$true] %s35_s25 }
  0x3b   :  { %s3054_s21 = scalar_lea.hbm %s4061_s15, 512 }
  0x3c   :  { %p3055_p10 = scmp.ne.s32.totalorder %s4061_s15, %s3054_s21  ;;  %p3058_p11 = scmp.lt.u32.totalorder %s3054_s21, %s4061_s15 }
  0x3e   :  { %p3060_p12 = pnand %p3058_p11, %p3055_p10 }
  0x40   :  { %3063 = shalt.err (!%p3060_p12)
}
  0x41   :  { %s3064_s10 = scalar_lea.vmem %s124_s18, 512  ;;  %p3069_p0 = scmp.lt.s32.totalorder %s124_s18, %s124_s18 }
  0x42   :  { %p3065_p13 = scmp.ne.s32.totalorder %s124_s18, %s3064_s10  ;;  %p3070_p1 = scmp.lt.s32.totalorder %s3064_s10, %s3064_s10 }
  0x44   :  { %p3071_p2 = por %p3070_p1, %p3069_p0 }
  0x46   :  { %p3072_p3 = pnand %p3071_p2, %p3065_p13 }
  0x48   :  { %3075 = shalt.err (!%p3072_p3)
}
  0x49   :  { %s3225_s1 = smov 128   ;;  %s3226_s28 = smov 8  }
  0x4a   :  { %129 = dma.hbm_to_vmem [thread:$0]  %s4061_s15, 512, %s124_s18, [#allocation15], %s3225_s1, %s3225_s1, %s3226_s28  }
  0x4b   :  { %s4067_s30 = sld [smem:[#allocation25_spill]] }
  0x51   :  { %s3076_s4 = scalar_lea.hbm %s4067_s30, 8192 }
  0x52   :  { %p3077_p4 = scmp.ne.s32.totalorder %s4067_s30, %s3076_s4  ;;  %p3080_p5 = scmp.lt.u32.totalorder %s3076_s4, %s4067_s30 }
  0x54   :  { %p3082_p6 = pnand %p3080_p5, %p3077_p4 }
  0x56   :  { %3085 = shalt.err (!%p3082_p6)
}
  0x57   :  { %s3086_s23 = scalar_lea.vmem %s36_s25, 8192  ;;  %p3091_p8 = scmp.lt.s32.totalorder %s36_s25, %s36_s25 }
  0x58   :  { %p3087_p7 = scmp.ne.s32.totalorder %s36_s25, %s3086_s23  ;;  %p3092_p9 = scmp.lt.s32.totalorder %s3086_s23, %s3086_s23 }
  0x5a   :  { %p3093_p10 = por %p3092_p9, %p3091_p8 }
  0x5c   :  { %p3094_p11 = pnand %p3093_p10, %p3087_p7 }
  0x5e   :  { %3097 = shalt.err (!%p3094_p11)
}
  0x5f   :  { %s3227_s15 = smov 256   ;;  %s3228_s18 = smov 16  }
  0x60   :  { %41 = dma.hbm_to_vmem [thread:$0]  %s4067_s30, 8192, %s36_s25, [#allocation3], %s3227_s15, %s3227_s15, %s3228_s18  }
  0x61   :  { %s3229_s10 = smov [#allocation7]   ;;  %s3230_s6 = smov [#allocation10]  }
  0x62   :  { %s61_s29 = sshll.u32 %s3229_s10, 4  ;;  %s86_s27 = sshll.u32 %s3230_s6, 4  ;;  %s62_s29 = int_to_ptr.vmem [resolvable:$true] %s61_s29  ;;  %s87_s27 = int_to_ptr.vmem [resolvable:$true] %s86_s27 }
  0x63   :  { %s3098_s19 = scalar_lea.hbm %s4051_s5, 4096 }
  0x64   :  { %p3099_p12 = scmp.ne.s32.totalorder %s4051_s5, %s3098_s19  ;;  %p3102_p13 = scmp.lt.u32.totalorder %s3098_s19, %s4051_s5 }
  0x66   :  { %p3104_p0 = pnand %p3102_p13, %p3099_p12 }
  0x68   :  { %3107 = shalt.err (!%p3104_p0)
}
  0x69   :  { %s3108_s25 = scalar_lea.vmem %s62_s29, 4096  ;;  %p3113_p2 = scmp.lt.s32.totalorder %s62_s29, %s62_s29 }
  0x6a   :  { %p3109_p1 = scmp.ne.s32.totalorder %s62_s29, %s3108_s25  ;;  %p3114_p3 = scmp.lt.s32.totalorder %s3108_s25, %s3108_s25 }
  0x6c   :  { %p3115_p4 = por %p3114_p3, %p3113_p2 }
  0x6e   :  { %p3116_p5 = pnand %p3115_p4, %p3109_p1 }
  0x70   :  { %3119 = shalt.err (!%p3116_p5)
}
  0x71   :  { %67 = dma.hbm_to_vmem [thread:$0]  %s4051_s5, 4096, %s62_s29, [#allocation6], %s3225_s1, %s3225_s1, %s3226_s28  }
  0x72   :  { %s3120_s26 = scalar_lea.hbm %s4054_s8, 128 }
  0x73   :  { %p3121_p6 = scmp.ne.s32.totalorder %s4054_s8, %s3120_s26  ;;  %p3124_p7 = scmp.lt.u32.totalorder %s3120_s26, %s4054_s8 }
  0x75   :  { %p3126_p8 = pnand %p3124_p7, %p3121_p6 }
  0x77   :  { %3129 = shalt.err (!%p3126_p8)
}
  0x78   :  { %s3130_s19 = scalar_lea.vmem %s87_s27, 128  ;;  %p3135_p10 = scmp.lt.s32.totalorder %s87_s27, %s87_s27 }
  0x79   :  { %p3131_p9 = scmp.ne.s32.totalorder %s87_s27, %s3130_s19  ;;  %p3136_p11 = scmp.lt.s32.totalorder %s3130_s19, %s3130_s19 }
  0x7b   :  { %p3137_p12 = por %p3136_p11, %p3135_p10 }
  0x7d   :  { %p3138_p13 = pnand %p3137_p12, %p3131_p9 }
  0x7f   :  { %3141 = shalt.err (!%p3138_p13)
}
  0x80   :  { %89 = dma.hbm_to_vmem [thread:$0]  %s4054_s8, 128, %s87_s27, [#allocation9]  }
  0x81   :  { %s3231_s20 = smov [#allocation13]   ;;  %s3232_s22 = smov [#allocation16]  }
  0x82   :  { %s110_s21 = sshll.u32 %s3231_s20, 4  ;;  %s135_s23 = sshll.u32 %s3232_s22, 4  ;;  %s111_s21 = int_to_ptr.vmem [resolvable:$true] %s110_s21  ;;  %s136_s23 = int_to_ptr.vmem [resolvable:$true] %s135_s23 }
  0x83   :  { %s3142_s15 = scalar_lea.hbm %s4058_s12, 16 }
  0x84   :  { %p3143_p0 = scmp.ne.s32.totalorder %s4058_s12, %s3142_s15  ;;  %p3146_p1 = scmp.lt.u32.totalorder %s3142_s15, %s4058_s12 }
  0x86   :  { %p3148_p2 = pnand %p3146_p1, %p3143_p0 }
  0x88   :  { %3151 = shalt.err (!%p3148_p2)
}
  0x89   :  { %s3152_s8 = scalar_lea.vmem %s111_s21, 16  ;;  %s3156_s27 = scalar_lea.vmem %s111_s21, 32 }
  0x8a   :  { %p3153_p3 = scmp.ne.s32.totalorder %s111_s21, %s3152_s8  ;;  %p3157_p4 = scmp.lt.s32.totalorder %s111_s21, %s111_s21 }
  0x8b   :  { %p3158_p5 = scmp.lt.s32.totalorder %s3156_s27, %s3152_s8 }
  0x8d   :  { %p3159_p6 = por %p3158_p5, %p3157_p4 }
  0x8f   :  { %p3160_p7 = pnand %p3159_p6, %p3153_p3 }
  0x91   :  { %3163 = shalt.err (!%p3160_p7)
}
  0x92   :  { %113 = dma.hbm_to_vmem [thread:$0]  %s4058_s12, 16, %s111_s21, [#allocation12]  }
  0x93   :  { %s3164_s5 = scalar_lea.hbm %s4062_s16, 512 }
  0x94   :  { %p3165_p8 = scmp.ne.s32.totalorder %s4062_s16, %s3164_s5  ;;  %p3168_p9 = scmp.lt.u32.totalorder %s3164_s5, %s4062_s16 }
  0x96   :  { %p3170_p10 = pnand %p3168_p9, %p3165_p8 }
  0x98   :  { %3173 = shalt.err (!%p3170_p10)
}
  0x99   :  { %s3174_s30 = scalar_lea.vmem %s136_s23, 512  ;;  %p3179_p12 = scmp.lt.s32.totalorder %s136_s23, %s136_s23 }
  0x9a   :  { %p3175_p11 = scmp.ne.s32.totalorder %s136_s23, %s3174_s30  ;;  %p3180_p13 = scmp.lt.s32.totalorder %s3174_s30, %s3174_s30 }
  0x9c   :  { %p3181_p0 = por %p3180_p13, %p3179_p12 }
  0x9e   :  { %p3182_p1 = pnand %p3181_p0, %p3175_p11 }
  0xa0   :  { %3185 = shalt.err (!%p3182_p1)
}
  0xa1   :  { %141 = dma.hbm_to_vmem [thread:$0]  %s4062_s16, 512, %s136_s23, [#allocation15], %s3225_s1, %s3225_s1, %s3226_s28  }
  0xa2   :  { %3208 = dma.done.wait [#allocation3], 8192  }
  0xa3   :  { %3209 = vsyncadd [#allocation3], 4294959104 }
  0xa4   :  { %3210 = dma.done.wait [#allocation6], 4224  }
  0xa5   :  { %3211 = vsyncadd [#allocation6], 4294963072 }
  0xa6   :  { %3212 = dma.done.wait [#allocation9], 192  }
  0xa7   :  { %3213 = vsyncadd [#allocation9], 4294967104 }
  0xa8   :  { %3214 = dma.done.wait [#allocation12], 64  }
  0xa9   :  { %3215 = vsyncadd [#allocation12], 4294967232 }
  0xaa   :  { %3216 = dma.done.wait [#allocation15], 1024  }
  0xab   :  { %3217 = vsyncadd [#allocation15], 4294966272  ;;  %v171_v0 = vld [vmem:[#allocation2 + $0x8] sm:$0xff]  ;;  %v173_v1 = vld [vmem:[#allocation2 + $0x18] sm:$0xff]  ;;  %s4068_s28 = sld [smem:[#allocation24_spill]]  ;;  %vm336_vm0 = vcmask 1041408  }
  0xac   :  { %v170_v2 = vld [vmem:[#allocation2] sm:$0xff]  ;;  %v2619_v3 = vpack.c.bf16 %v173_v1, %v171_v0  ;;  %v172_v4 = vld [vmem:[#allocation2 + $0x10] sm:$0xff]  ;;  %v175_v5 = vld [vmem:[#allocation2 + $0x28] sm:$0xff]  ;;  %vm552_vm1 = vcmask 1043456   ;;  %vm548_vm2 = vcmask 31744   ;;  %vm3235_vm3 = vmmov 0  }
  0xad   :  { %v177_v6 = vld [vmem:[#allocation2 + $0x38] sm:$0xff]  ;;  %v2621_v7 = vpack.c.bf16 %v172_v4, %v170_v2  ;;  %v174_v9 = vld [vmem:[#allocation2 + $0x20] sm:$0xff]  ;;  %v176_v10 = vld [vmem:[#allocation2 + $0x30] sm:$0xff]  ;;  %vm1049_vm4 = vcmask 64512   ;;  %s3237_s15 = smov 96   ;;  %vm1434_vm5 = vcmask 261120  }
  0xae   :  { %v2623_v8 = vpack.c.bf16 %v177_v6, %v175_v5  ;;  %v179_v11 = vld [vmem:[#allocation2 + $0x48] sm:$0xff]  ;;  %2620 = vmatprep.subr.bf16.mxu0 %v2619_v3  ;;  %v181_v12 = vld [vmem:[#allocation2 + $0x58] sm:$0xff]  ;;  %v2625_v13 = vpack.c.bf16 %v176_v10, %v174_v9  ;;  %v178_v15 = vld [vmem:[#allocation2 + $0x40] sm:$0xff]  ;;  %vm2011_vm6 = vcmask 254976  }
  0xaf   :  { %2622 = vmatpush1.bf16.msra.mxu0 %v2621_v7  ;;  %v2627_v14 = vpack.c.bf16 %v181_v12, %v179_v11  ;;  %v180_v16 = vld [vmem:[#allocation2 + $0x50] sm:$0xff]  ;;  %v183_v17 = vld [vmem:[#allocation2 + $0x68] sm:$0xff]  ;;  %v185_v18 = vld [vmem:[#allocation2 + $0x78] sm:$0xff] }
  0xb0   :  { %2624 = vmatprep.subr.bf16.mxu0 %v2623_v8  ;;  %v2629_v19 = vpack.c.bf16 %v180_v16, %v178_v15  ;;  %v2631_v20 = vpack.c.bf16 %v185_v18, %v183_v17  ;;  %v182_v21 = vld [vmem:[#allocation2 + $0x60] sm:$0xff]  ;;  %v184_v22 = vld [vmem:[#allocation2 + $0x70] sm:$0xff]  ;;  %v187_v23 = vld [vmem:[#allocation2 + $0x88] sm:$0xff] }
  0xb1   :  { %v189_v24 = vld [vmem:[#allocation2 + $0x98] sm:$0xff]  ;;  %v2633_v25 = vpack.c.bf16 %v184_v22, %v182_v21  ;;  %v186_v27 = vld [vmem:[#allocation2 + $0x80] sm:$0xff]  ;;  %v188_v28 = vld [vmem:[#allocation2 + $0x90] sm:$0xff] }
  0xb2   :  { %v2635_v26 = vpack.c.bf16 %v189_v24, %v187_v23  ;;  %v191_v29 = vld [vmem:[#allocation2 + $0xa8] sm:$0xff]  ;;  %v193_v30 = vld [vmem:[#allocation2 + $0xb8] sm:$0xff]  ;;  %v2637_v31 = vpack.c.bf16 %v188_v28, %v186_v27  ;;  %v190_v33 = vld [vmem:[#allocation2 + $0xa0] sm:$0xff] }
  0xb3   :  { %2626 = vmatpush1.bf16.msra.mxu0 %v2625_v13  ;;  %v2639_v32 = vpack.c.bf16 %v193_v30, %v191_v29  ;;  %v192_v34 = vld [vmem:[#allocation2 + $0xb0] sm:$0xff]  ;;  %v195_v35 = vld [vmem:[#allocation2 + $0xc8] sm:$0xff]  ;;  %v197_v36 = vld [vmem:[#allocation2 + $0xd8] sm:$0xff] }
  0xb4   :  { %2628 = vmatprep.subr.bf16.mxu0 %v2627_v14  ;;  %v2641_v37 = vpack.c.bf16 %v192_v34, %v190_v33  ;;  %v194_v38 = vld [vmem:[#allocation2 + $0xc0] sm:$0xff]  ;;  %v196_v39 = vld [vmem:[#allocation2 + $0xd0] sm:$0xff]  ;;  %v199_v40 = vld [vmem:[#allocation2 + $0xe8] sm:$0xff]  ;;  %v2643_v41 = vpack.c.bf16 %v197_v36, %v195_v35 }
  0xb5   :  { %v201_v42 = vld [vmem:[#allocation2 + $0xf8] sm:$0xff]  ;;  %v3450_v43 = vld.sshfl [vmem:[%s4068_s28] sm:$0x33 pattern:$0x76325410]  ;;  %v384_v46 = vld [vmem:[%s4049_s3 + $0x88] sm:$0xff]  ;;  %v2645_v54 = vpack.c.bf16 %v196_v39, %v194_v38 }
  0xb6   :  { %v383_v44 = vld [vmem:[%s4049_s3 + $0x80] sm:$0xff]  ;;  %v262_v45 = vcombine.high %v3450_v43, %v3450_v43  ;;  %v368_v48 = vld [vmem:[%s4049_s3 + $0x8] sm:$0xff]  ;;  %v385_v51 = vld [vmem:[%s4049_s3 + $0x90] sm:$0xff]  ;;  %v2647_v59 = vpack.c.bf16 %v201_v42, %v199_v40 }
  0xb7   :  { %2630 = vmatpush1.bf16.msra.mxu0 %v2629_v19  ;;  %v367_v47 = vld [vmem:[%s4049_s3] sm:$0xff]  ;;  %v3466_v49 = vpack.c.bf16 %v384_v46, %v383_v44  ;;  %v386_v52 = vld [vmem:[%s4049_s3 + $0x98] sm:$0xff]  ;;  %v369_v53 = vld [vmem:[%s4049_s3 + $0x10] sm:$0xff] }
  0xb8   :  { %2632 = vmatprep.subr.bf16.mxu0 %v2631_v20  ;;  %v3468_v50 = vpack.c.bf16 %v368_v48, %v367_v47  ;;  %329 = vmatprep.mubr.f32.mxu0 %v262_v45  ;;  %v3479_v55 = vpack.c.bf16 %v386_v52, %v385_v51  ;;  %v370_v56 = vld [vmem:[%s4049_s3 + $0x18] sm:$0xff]  ;;  %v387_v57 = vld [vmem:[%s4049_s3 + $0xa0] sm:$0xff]  ;;  %v388_v58 = vld [vmem:[%s4049_s3 + $0xa8] sm:$0xff] }
  0xb9   :  { %v198_v60 = vld [vmem:[#allocation2 + $0xe0] sm:$0xff]  ;;  %v200_v61 = vld [vmem:[#allocation2 + $0xf0] sm:$0xff]  ;;  %2684 = vmatprep.subr.bf16.mxu1 %v3466_v49  ;;  %v203_v62 = vld [vmem:[#allocation2 + $0x108] sm:$0xff]  ;;  %v3492_v0 = vpack.c.bf16 %v370_v56, %v369_v53  ;;  %v3495_v1 = vpack.c.bf16 %v388_v58, %v387_v57 }
  0xba   :  { %v205_v63 = vld [vmem:[#allocation2 + $0x118] sm:$0xff]  ;;  %2686 = vmatpush3.bf16.msra.mxu1 %v3468_v50  ;;  %v371_v2 = vld [vmem:[%s4049_s3 + $0x20] sm:$0xff]  ;;  %v372_v3 = vld [vmem:[%s4049_s3 + $0x28] sm:$0xff]  ;;  %v2649_v4 = vpack.c.bf16 %v200_v61, %v198_v60 }
  0xbb   :  { %2634 = vmatpush1.bf16.msra.mxu0 %v2633_v25  ;;  %2688 = vmatprep.subr.bf16.mxu1 %v3479_v55  ;;  %v389_v5 = vld [vmem:[%s4049_s3 + $0xb0] sm:$0xff]  ;;  %v390_v6 = vld [vmem:[%s4049_s3 + $0xb8] sm:$0xff]  ;;  %v2651_v7 = vpack.c.bf16 %v205_v63, %v203_v62  ;;  %v202_v8 = vld [vmem:[#allocation2 + $0x100] sm:$0xff]  ;;  %v3510_v12 = vpack.c.bf16 %v372_v3, %v371_v2 }
  0xbc   :  { %2636 = vmatprep.subr.bf16.mxu0 %v2635_v26  ;;  %v204_v9 = vld [vmem:[#allocation2 + $0x110] sm:$0xff]  ;;  %v207_v10 = vld [vmem:[#allocation2 + $0x128] sm:$0xff]  ;;  %v209_v11 = vld [vmem:[#allocation2 + $0x138] sm:$0xff]  ;;  %v3513_v13 = vpack.c.bf16 %v390_v6, %v389_v5 }
  0xbd   :  { %v373_v14 = vld [vmem:[%s4049_s3 + $0x30] sm:$0xff]  ;;  %v374_v15 = vld [vmem:[%s4049_s3 + $0x38] sm:$0xff]  ;;  %v2653_v16 = vpack.c.bf16 %v204_v9, %v202_v8  ;;  %v2655_v17 = vpack.c.bf16 %v209_v11, %v207_v10  ;;  %v206_v18 = vld [vmem:[#allocation2 + $0x120] sm:$0xff] }
  0xbe   :  { %2690 = vmatpush3.bf16.msra.mxu1 %v3492_v0  ;;  %v208_v19 = vld [vmem:[#allocation2 + $0x130] sm:$0xff]  ;;  %v211_v20 = vld [vmem:[#allocation2 + $0x148] sm:$0xff]  ;;  %v213_v21 = vld [vmem:[#allocation2 + $0x158] sm:$0xff]  ;;  %v3522_v22 = vpack.c.bf16 %v374_v15, %v373_v14 }
  0xbf   :  { %2638 = vmatpush1.bf16.msra.mxu0 %v2637_v31  ;;  %2692 = vmatprep.subr.bf16.mxu1 %v3495_v1  ;;  %v2657_v23 = vpack.c.bf16 %v208_v19, %v206_v18  ;;  %v2659_v24 = vpack.c.bf16 %v213_v21, %v211_v20  ;;  %v210_v25 = vld [vmem:[#allocation2 + $0x140] sm:$0xff]  ;;  %v212_v26 = vld [vmem:[#allocation2 + $0x150] sm:$0xff]  ;;  %v215_v27 = vld [vmem:[#allocation2 + $0x168] sm:$0xff] }
  0xc0   :  { %2640 = vmatprep.subr.bf16.mxu0 %v2639_v32  ;;  %v217_v28 = vld [vmem:[#allocation2 + $0x178] sm:$0xff]  ;;  %v2661_v29 = vpack.c.bf16 %v212_v26, %v210_v25  ;;  %v214_v31 = vld [vmem:[#allocation2 + $0x160] sm:$0xff]  ;;  %v216_v32 = vld [vmem:[#allocation2 + $0x170] sm:$0xff]  ;;  %v236_v26 = vlaneseq }
  0xc1   :  { %v2663_v30 = vpack.c.bf16 %v217_v28, %v215_v27  ;;  %v219_v33 = vld [vmem:[#allocation2 + $0x188] sm:$0xff]  ;;  %v221_v34 = vld [vmem:[#allocation2 + $0x198] sm:$0xff]  ;;  %v2665_v35 = vpack.c.bf16 %v216_v32, %v214_v31  ;;  %v220_v38 = vld [vmem:[#allocation2 + $0x190] sm:$0xff] }
  0xc2   :  { %2694 = vmatpush3.bf16.msra.mxu1 %v3510_v12  ;;  %v2667_v36 = vpack.c.bf16 %v221_v34, %v219_v33  ;;  %v223_v39 = vld [vmem:[#allocation2 + $0x1a8] sm:$0xff]  ;;  %v225_v40 = vld [vmem:[#allocation2 + $0x1b8] sm:$0xff]  ;;  %v222_v44 = vld [vmem:[#allocation2 + $0x1a0] sm:$0xff]  ;;  %v3600_v27 = vshrl.u32 %v236_v26, 7 }
  0xc3   :  { %2642 = vmatpush1.bf16.msra.mxu0 %v2641_v37  ;;  %2696 = vmatprep.subr.bf16.mxu1 %v3513_v13  ;;  %v218_v37 = vld [vmem:[#allocation2 + $0x180] sm:$0xff]  ;;  %v2671_v42 = vpack.c.bf16 %v225_v40, %v223_v39  ;;  %v224_v45 = vld [vmem:[#allocation2 + $0x1b0] sm:$0xff]  ;;  %v227_v46 = vld [vmem:[#allocation2 + $0x1c8] sm:$0xff] }
  0xc4   :  { %2644 = vmatprep.subr.bf16.mxu0 %v2643_v41  ;;  %v2669_v41 = vpack.c.bf16 %v220_v38, %v218_v37  ;;  %v229_v47 = vld [vmem:[#allocation2 + $0x1d8] sm:$0xff]  ;;  %v2673_v48 = vpack.c.bf16 %v224_v45, %v222_v44  ;;  %v226_v52 = vld [vmem:[#allocation2 + $0x1c0] sm:$0xff]  ;;  %v228_v53 = vld [vmem:[#allocation2 + $0x1d0] sm:$0xff]  ;;  %v3603_v28 = vsub.s32 0, %v3600_v27 }
  0xc5   :  { %v2675_v51 = vpack.c.bf16 %v229_v47, %v227_v46  ;;  %v233_v56 = vld [vmem:[#allocation2 + $0x1f8] sm:$0xff]  ;;  %v2677_v57 = vpack.c.bf16 %v228_v53, %v226_v52  ;;  %v232_v60 = vld [vmem:[#allocation2 + $0x1f0] sm:$0xff]  ;;  %v391_v62 = vld [vmem:[%s4049_s3 + $0xc0] sm:$0xff] }
  0xc6   :  { %2698 = vmatpush3.bf16.msra.mxu1 %v3522_v22  ;;  %v392_v63 = vld [vmem:[%s4049_s3 + $0xc8] sm:$0xff]  ;;  %v375_v3 = vld [vmem:[%s4049_s3 + $0x40] sm:$0xff]  ;;  %v394_v6 = vld [vmem:[%s4049_s3 + $0xd8] sm:$0xff] }
  0xc7   :  { %2646 = vmatpush1.bf16.msra.mxu0 %v2645_v54  ;;  %v231_v54 = vld [vmem:[#allocation2 + $0x1e8] sm:$0xff]  ;;  %v3533_v2 = vpack.c.bf16 %v392_v63, %v391_v62  ;;  %v377_v8 = vld [vmem:[%s4049_s3 + $0x50] sm:$0xff]  ;;  %v378_v9 = vld [vmem:[%s4049_s3 + $0x58] sm:$0xff] }
  0xc8   :  { %2648 = vmatprep.subr.bf16.mxu0 %v2647_v59  ;;  %v2679_v58 = vpack.c.bf16 %v233_v56, %v231_v54  ;;  %v230_v59 = vld [vmem:[#allocation2 + $0x1e0] sm:$0xff]  ;;  %v3559_v10 = vpack.c.bf16 %v378_v9, %v377_v8  ;;  %v396_v14 = vld [vmem:[%s4049_s3 + $0xe8] sm:$0xff]  ;;  %v397_v19 = vld [vmem:[%s4049_s3 + $0xf0] sm:$0xff] }
  0xc9   :  { %v2681_v61 = vpack.c.bf16 %v232_v60, %v230_v59  ;;  %2700 = vmatprep.subr.bf16.mxu1 %v3533_v2  ;;  %v395_v11 = vld [vmem:[%s4049_s3 + $0xe0] sm:$0xff]  ;;  %v398_v20 = vld [vmem:[%s4049_s3 + $0xf8] sm:$0xff]  ;;  %v381_v21 = vld [vmem:[%s4049_s3 + $0x70] sm:$0xff] }
  0xca   :  { %v3569_v15 = vpack.c.bf16 %v396_v14, %v395_v11  ;;  %v783_v26 = vld [vmem:[#allocation7 + $0x98] sm:$0xff] }
  0xcb   :  { %2650 = vmatpush1.bf16.msra.mxu0 %v2649_v4  ;;  %v376_v4 = vld [vmem:[%s4049_s3 + $0x48] sm:$0xff] }
  0xcc   :  { %2652 = vmatprep.subr.bf16.mxu0 %v2651_v7  ;;  %v3541_v5 = vpack.c.bf16 %v376_v4, %v375_v3 }
  0xce   :  { %2702 = vmatpush3.bf16.msra.mxu1 %v3541_v5 }
  0xcf   :  { %2654 = vmatpush1.bf16.msra.mxu0 %v2653_v16  ;;  %v379_v16 = vld [vmem:[%s4049_s3 + $0x60] sm:$0xff] }
  0xd0   :  { %2656 = vmatprep.subr.bf16.mxu0 %v2655_v17  ;;  %v380_v17 = vld [vmem:[%s4049_s3 + $0x68] sm:$0xff] }
  0xd1   :  { %v3577_v18 = vpack.c.bf16 %v380_v17, %v379_v16 }
  0xd3   :  { %2658 = vmatpush1.bf16.msra.mxu0 %v2657_v23  ;;  %v3590_v23 = vpack.c.bf16 %v398_v20, %v397_v19  ;;  %v780_v19 = vld [vmem:[#allocation7 + $0x80] sm:$0xff]  ;;  %v781_v20 = vld [vmem:[#allocation7 + $0x88] sm:$0xff] }
  0xd4   :  { %2660 = vmatprep.subr.bf16.mxu0 %v2659_v24  ;;  %v382_v24 = vld [vmem:[%s4049_s3 + $0x78] sm:$0xff] }
  0xd5   :  { %v3595_v25 = vpack.c.bf16 %v382_v24, %v381_v21  ;;  %v764_v21 = vld [vmem:[#allocation7] sm:$0xff]  ;;  %v765_v24 = vld [vmem:[#allocation7 + $0x8] sm:$0xff] }
  0xd7   :  { %2662 = vmatpush1.bf16.msra.mxu0 %v2661_v29  ;;  %v3608_v29 = vld [vmem:[%s4048_s2] sm:$0x77] }
  0xd8   :  { %2664 = vmatprep.subr.bf16.mxu0 %v2663_v30  ;;  %v242_v30 = vsub.s32 4, %v3600_v27  ;;  %v239_v31 = vrot.slane %v3608_v29, %v3603_v28 }
  0xda   :  { %v243_v32 = vrot.slane %v3608_v29, %v242_v30  ;;  %v2749_v30 = vpack.c.bf16 %v765_v24, %v764_v21  ;;  %v3671_v21 = vsub.s32 1, %v3600_v27  ;;  %v3675_v24 = vsub.s32 2, %v3600_v27 }
  0xdb   :  { %2666 = vmatpush1.bf16.msra.mxu0 %v2665_v35 }
  0xdc   :  { %2668 = vmatprep.subr.bf16.mxu0 %v2667_v36  ;;  %v253_v33 = vrot.slane %v243_v32, %v3603_v28  ;;  %v766_v32 = vld [vmem:[#allocation7 + $0x10] sm:$0xff] }
  0xdf   :  { %2670 = vmatpush1.bf16.msra.mxu0 %v2669_v41 }
  0xe0   :  { %2672 = vmatprep.subr.bf16.mxu0 %v2671_v42 }
  0xe3   :  { %2674 = vmatpush1.bf16.msra.mxu0 %v2673_v48 }
  0xe4   :  { %2676 = vmatprep.subr.bf16.mxu0 %v2675_v51 }
  0xe7   :  { %2678 = vmatpush1.bf16.msra.mxu0 %v2677_v57 }
  0xe8   :  { %2680 = vmatprep.subr.bf16.mxu0 %v2679_v58 }
  0xeb   :  { %2682 = vmatpush1.bf16.msra.mxu0 %v2681_v61 }
  0xee   :  { %330 = vmatmul.mubr.f32.vlgmr.msra.gmra.mrb[0].mxu0 %v3450_v43  ;;  %v393_v43 = vld [vmem:[%s4049_s3 + $0xd0] sm:$0xff] }
  0xef   :  { %v3551_v7 = vpack.c.bf16 %v394_v6, %v393_v43 }
  0xf1   :  { %2704 = vmatprep.subr.bf16.mxu1 %v3551_v7 }
  0xf2   :  { %2706 = vmatpush3.bf16.msra.mxu1 %v3559_v10 }
  0xf3   :  { %2708 = vmatprep.subr.bf16.mxu1 %v3569_v15 }
  0xf6   :  { %2710 = vmatpush3.bf16.msra.mxu1 %v3577_v18 }
  0xf7   :  { %2712 = vmatprep.subr.bf16.mxu1 %v3590_v23 }
  0xfa   :  { %2714 = vmatpush3.bf16.msra.mxu1 %v3595_v25 }
  0xfb   :  { %2716 = vmatprep.subr.bf16.mxu1 %v3466_v49  ;;  %v249_v49 = vrot.slane %v239_v31, %v3603_v28 }
 0x1c1   :  { %v331_v34 = vpop.f32.mrb[0].mxu0 }
 0x1c2   :  { %v3616_v35 = vadd.f32 %v331_v34, %v249_v49  ;;  %v333_v36 = vpop.f32.mrb[1].mxu0  ;;  %v767_v49 = vld [vmem:[#allocation7 + $0x18] sm:$0xff]  ;;  %v785_v34 = vld [vmem:[#allocation7 + $0xa8] sm:$0xff] }
 0x1c3   :  { %v3618_v37 = vadd.f32 %v333_v36, %v253_v33  ;;  %v784_v33 = vld [vmem:[#allocation7 + $0xa0] sm:$0xff]  ;;  %v2753_v36 = vpack.c.bf16 %v767_v49, %v766_v32  ;;  %v745_v49 = vrot.slane %v3608_v29, %v3675_v24 }
 0x1c4   :  { %v337_v38 = vsel %vm336_vm0, %v3616_v35, 0.0  ;;  %v351_v3 = vmul.f32 %v3616_v35, %v3616_v35 }
 0x1c5   :  { %v338_v39 = vrot.slane %v337_v38, 4  ;;  %v352_v40 = vmul.f32 %v3618_v37, %v3618_v37  ;;  %v344_v41 = vsel %vm336_vm0, %v3618_v37, 0.0 }
 0x1c6   :  { %v345_v42 = vrot.slane %v344_v41, 4  ;;  %v353_v4 = vsel %vm336_vm0, %v351_v3, 0.0  ;;  %v792_v3 = vld [vmem:[#allocation7 + $0xe0] sm:$0xff] }
 0x1c7   :  { %v339_v44 = vadd.f32 %v338_v39, %v337_v38  ;;  %v360_v45 = vsel %vm336_vm0, %v352_v40, 0.0  ;;  %v354_v43 = vrot.slane %v353_v4, 4  ;;  %v2755_v38 = vpack.c.bf16 %v785_v34, %v784_v33  ;;  %v768_v39 = vld [vmem:[#allocation7 + $0x20] sm:$0xff]  ;;  %v769_v40 = vld [vmem:[#allocation7 + $0x28] sm:$0xff] }
 0x1c8   :  { %v361_v46 = vrot.slane %v360_v45, 4  ;;  %v346_v47 = vadd.f32 %v345_v42, %v344_v41  ;;  %v786_v41 = vld [vmem:[#allocation7 + $0xb0] sm:$0xff]  ;;  %v787_v42 = vld [vmem:[#allocation7 + $0xb8] sm:$0xff] }
 0x1c9   :  { %v340_v48 = vrot.slane %v339_v44, 2 }
 0x1ca   :  { %v347_v51 = vrot.slane %v346_v47, 2  ;;  %v362_v52 = vadd.f32 %v361_v46, %v360_v45  ;;  %v2759_v45 = vpack.c.bf16 %v787_v42, %v786_v41  ;;  %v770_v46 = vld [vmem:[#allocation7 + $0x30] sm:$0xff] }
 0x1cb   :  { %v341_v53 = vadd.f32 %v340_v48, %v339_v44  ;;  %v2757_v44 = vpack.c.bf16 %v769_v40, %v768_v39  ;;  %v788_v48 = vld [vmem:[#allocation7 + $0xc0] sm:$0xff] }
 0x1cc   :  { %v348_v54 = vadd.f32 %v347_v51, %v346_v47  ;;  %v363_v56 = vrot.slane %v362_v52, 2  ;;  %v771_v47 = vld [vmem:[#allocation7 + $0x38] sm:$0xff]  ;;  %v789_v51 = vld [vmem:[#allocation7 + $0xc8] sm:$0xff] }
 0x1cd   :  { %v342_v57 = vrot.slane %v341_v53, 1 }
 0x1ce   :  { %v349_v58 = vrot.slane %v348_v54, 1  ;;  %v364_v59 = vadd.f32 %v363_v56, %v362_v52  ;;  %v2761_v52 = vpack.c.bf16 %v771_v47, %v770_v46  ;;  %v773_v56 = vld [vmem:[#allocation7 + $0x48] sm:$0xff] }
 0x1cf   :  { %v343_v62 = vadd.f32 %v342_v57, %v341_v53  ;;  %v2763_v53 = vpack.c.bf16 %v789_v51, %v788_v48 }
 0x1d0   :  { %v350_v60 = vadd.f32 %v349_v58, %v348_v54  ;;  %v365_v61 = vrot.slane %v364_v59, 1  ;;  %v772_v54 = vld [vmem:[#allocation7 + $0x40] sm:$0xff]  ;;  %v790_v58 = vld [vmem:[#allocation7 + $0xd0] sm:$0xff] }
 0x1d1   :  { %v2765_v57 = vpack.c.bf16 %v773_v56, %v772_v54  ;;  %v893_v54 = vld [vmem:[%s4053_s7 + $0x38] sm:$0xff] }
 0x1d2   :  { %463 = vmatprep.mubr.f32.mxu1 %v350_v60  ;;  %v366_v63 = vadd.f32 %v365_v61, %v364_v59  ;;  %v791_v59 = vld [vmem:[#allocation7 + $0xd8] sm:$0xff]  ;;  %v774_v61 = vld [vmem:[#allocation7 + $0x50] sm:$0xff] }
 0x1d3   :  { %464 = vmatmul.mubr.f32.vlgmr.msra.gmra.mrb[0].mxu1 %v343_v62  ;;  %v2767_v60 = vpack.c.bf16 %v791_v59, %v790_v58  ;;  %v775_v62 = vld [vmem:[#allocation7 + $0x58] sm:$0xff]  ;;  %v895_v58 = vld [vmem:[%s4053_s7 + $0x48] sm:$0xff] }
 0x1d4   :  { %2718 = vmatpush3.bf16.msra.mxu1 %v3468_v50  ;;  %534 = vmatprep.mubr.f32.mxu1 %v366_v63  ;;  %v355_v50 = vadd.f32 %v354_v43, %v353_v4  ;;  %v2769_v63 = vpack.c.bf16 %v775_v62, %v774_v61  ;;  %v793_v4 = vld [vmem:[#allocation7 + $0xe8] sm:$0xff]  ;;  %v897_v61 = vld [vmem:[%s4053_s7 + $0x58] sm:$0xff] }
 0x1d5   :  { %2720 = vmatprep.subr.bf16.mxu1 %v3479_v55  ;;  %v2771_v43 = vpack.c.bf16 %v793_v4, %v792_v3  ;;  %v899_v3 = vld [vmem:[%s4053_s7 + $0x68] sm:$0xff] }
 0x1d6   :  { %v356_v55 = vrot.slane %v355_v50, 2 }
 0x1d8   :  { %2722 = vmatpush3.bf16.msra.mxu1 %v3492_v0  ;;  %v357_v0 = vadd.f32 %v356_v55, %v355_v50  ;;  %v776_v50 = vld [vmem:[#allocation7 + $0x60] sm:$0xff]  ;;  %v777_v55 = vld [vmem:[#allocation7 + $0x68] sm:$0xff] }
 0x1d9   :  { %2724 = vmatprep.subr.bf16.mxu1 %v3495_v1 }
 0x1da   :  { %v358_v1 = vrot.slane %v357_v0, 1 }
 0x1dc   :  { %2726 = vmatpush3.bf16.msra.mxu1 %v3510_v12  ;;  %v359_v12 = vadd.f32 %v358_v1, %v357_v0  ;;  %v2773_v0 = vpack.c.bf16 %v777_v55, %v776_v50  ;;  %v794_v1 = vld [vmem:[#allocation7 + $0xf0] sm:$0xff] }
 0x1dd   :  { %2728 = vmatprep.subr.bf16.mxu1 %v3513_v13  ;;  %v545_v13 = vld [vmem:[#allocation5] sm:$0xff]  ;;  %v901_v50 = vld [vmem:[%s4053_s7 + $0x78] sm:$0xff] }
 0x1e0   :  { %2730 = vmatpush3.bf16.msra.mxu1 %v3522_v22  ;;  %v547_v22 = vcombine.high %v545_v13, %v545_v13 }
 0x1e1   :  { %2732 = vmatprep.subr.bf16.mxu1 %v3533_v2  ;;  %v3233_v2 = vmov 0.0  }
 0x1e4   :  { %2734 = vmatpush3.bf16.msra.mxu1 %v3541_v5 }
 0x1e5   :  { %2736 = vmatprep.subr.bf16.mxu1 %v3551_v7 }
 0x1e8   :  { %2738 = vmatpush3.bf16.msra.mxu1 %v3559_v10 }
 0x1e9   :  { %2740 = vmatprep.subr.bf16.mxu1 %v3569_v15 }
 0x1ec   :  { %2742 = vmatpush3.bf16.msra.mxu1 %v3577_v18 }
 0x1ed   :  { %2744 = vmatprep.subr.bf16.mxu1 %v3590_v23  ;;  %v2747_v23 = vpack.c.bf16 %v781_v20, %v780_v19 }
 0x1ef   :  { %2748 = vmatprep.subr.bf16.mxu0 %v2747_v23  ;;  %v728_v23 = vsub.s32 5, %v3600_v27 }
 0x1f0   :  { %2746 = vmatpush3.bf16.msra.mxu1 %v3595_v25  ;;  %v782_v25 = vld [vmem:[#allocation7 + $0x90] sm:$0xff]  ;;  %2750 = vmatpush3.bf16.msra.mxu0 %v2749_v30  ;;  %v725_v30 = vrot.slane %v3608_v29, %v3671_v21 }
 0x1f1   :  { %2195 = vmatprep.subr.msk.mxu1 %vm552_vm1, %v547_v22  ;;  %v2751_v31 = vpack.c.bf16 %v783_v26, %v782_v25  ;;  %v748_v25 = vsub.s32 6, %v3600_v27  ;;  %v729_v32 = vrot.slane %v3608_v29, %v728_v23 }
 0x1f2   :  { %v735_v27 = vrot.slane %v725_v30, %v3671_v21  ;;  %v1048_v30 = vld [vmem:[#allocation10] sm:$0xff] }
 0x1f3   :  { %535 = vmatmul.mubr.f32.vlgmr.msra.gmra.mrb[2].mxu1 %v359_v12  ;;  %2752 = vmatprep.subr.bf16.mxu0 %v2751_v31  ;;  %v795_v12 = vld [vmem:[#allocation7 + $0xf8] sm:$0xff]  ;;  %v749_v34 = vrot.slane %v3608_v29, %v748_v25  ;;  %v739_v42 = vrot.slane %v729_v32, %v3671_v21  ;;  %v1222_v32 = vld [vmem:[%s4055_s9 + $0x28] sm:$0xff] }
 0x1f4   :  { %2196 = vmatpush1.msk.msra.mxu1 %vm552_vm1, %v545_v13  ;;  %621 = vmatprep.mubr.f32.mxu1 %v3233_v2 }
 0x1f5   :  { %2198 = vmatprep.subr.msk.mxu1 %vm552_vm1, %v547_v22  ;;  %2754 = vmatpush3.bf16.msra.mxu0 %v2753_v36  ;;  %v778_v22 = vld [vmem:[#allocation7 + $0x70] sm:$0xff]  ;;  %v759_v47 = vrot.slane %v749_v34, %v3675_v24  ;;  %v1221_v34 = vld [vmem:[%s4055_s9 + $0x20] sm:$0xff] }
 0x1f6   :  { %2756 = vmatprep.subr.bf16.mxu0 %v2755_v38 }
 0x1f9   :  { %2758 = vmatpush3.bf16.msra.mxu0 %v2757_v44 }
 0x1fa   :  { %2760 = vmatprep.subr.bf16.mxu0 %v2759_v45  ;;  %v755_v45 = vrot.slane %v745_v49, %v3675_v24 }
 0x1fd   :  { %2762 = vmatpush3.bf16.msra.mxu0 %v2761_v52 }
 0x1fe   :  { %2764 = vmatprep.subr.bf16.mxu0 %v2763_v53 }
 0x201   :  { %2766 = vmatpush3.bf16.msra.mxu0 %v2765_v57  ;;  %v894_v57 = vld [vmem:[%s4053_s7 + $0x40] sm:$0xff] }
 0x202   :  { %2768 = vmatprep.subr.bf16.mxu0 %v2767_v60  ;;  %v2792_v59 = vpack.c.bf16 %v895_v58, %v894_v57  ;;  %v896_v60 = vld [vmem:[%s4053_s7 + $0x50] sm:$0xff]  ;;  %v1225_v57 = vld [vmem:[%s4055_s9 + $0x40] sm:$0xff]  ;;  %v1228_v58 = vld [vmem:[%s4055_s9 + $0x58] sm:$0xff] }
 0x203   :  { %v2795_v62 = vpack.c.bf16 %v897_v61, %v896_v60  ;;  %v1230_v60 = vld [vmem:[%s4055_s9 + $0x68] sm:$0xff]  ;;  %v1233_v61 = vld [vmem:[%s4055_s9 + $0x80] sm:$0xff] }
 0x205   :  { %2770 = vmatpush3.bf16.msra.mxu0 %v2769_v63  ;;  %v898_v63 = vld [vmem:[%s4053_s7 + $0x60] sm:$0xff] }
 0x206   :  { %2772 = vmatprep.subr.bf16.mxu0 %v2771_v43  ;;  %v2798_v4 = vpack.c.bf16 %v899_v3, %v898_v63  ;;  %v900_v43 = vld [vmem:[%s4053_s7 + $0x70] sm:$0xff]  ;;  %v1229_v63 = vld [vmem:[%s4055_s9 + $0x60] sm:$0xff]  ;;  %v1232_v3 = vld [vmem:[%s4055_s9 + $0x78] sm:$0xff] }
 0x207   :  { %v2801_v55 = vpack.c.bf16 %v901_v50, %v900_v43  ;;  %v1231_v43 = vld [vmem:[%s4055_s9 + $0x70] sm:$0xff]  ;;  %v1234_v50 = vld [vmem:[%s4055_s9 + $0x88] sm:$0xff] }
 0x209   :  { %2774 = vmatpush3.bf16.msra.mxu0 %v2773_v0  ;;  %v3741_v0 = vld [vmem:[#allocation8] sm:$0x7] }
 0x2a6   :  { %v2248_v5 = vpop.f32.mrb[0].mxu1 }
 0x2a7   :  { %v2249_v6 = vpop.f32.mrb[1].mxu1 }
 0x2a8   :  { %v2250_v7 = vadd.f32 %v2249_v6, %v2248_v5  ;;  %v779_v5 = vld [vmem:[#allocation7 + $0x78] sm:$0xff] }
 0x2a9   :  { %v2777_v6 = vpack.c.bf16 %v779_v5, %v778_v22 }
 0x2aa   :  { %v469_v8 = vmul.f32 0.0078125, %v2250_v7  ;;  %v886_v7 = vld [vmem:[%s4053_s7] sm:$0xff] }
 0x2ac   :  { %2197 = vmatmul.mubr.msk.f32.vlgmr.msra.gmra.mrb[4].mxu1 %vm548_vm2, %v469_v8  ;;  %v541_v14 = vmul.f32 %v469_v8, %v469_v8  ;;  %v887_v8 = vld [vmem:[%s4053_s7 + $0x8] sm:$0xff] }
 0x2ad   :  { %2199 = vmatpush1.msk.msra.mxu1 %vm552_vm1, %v545_v13  ;;  %695 = vmatprep.mubr.f32.mxu1 %v3233_v2  ;;  %v2775_v13 = vpack.c.bf16 %v795_v12, %v794_v1  ;;  %v800_v12 = vrot.slane %v3741_v0, %v3603_v28 }
 0x2af   :  { %2776 = vmatprep.subr.bf16.mxu0 %v2775_v13 }
 0x2b0   :  { %2778 = vmatpush3.bf16.msra.mxu0 %v2777_v6 }
 0x2c6   :  { %v2283_v9 = vpop.f32.mrb[2].mxu1 }
 0x2c7   :  { %v2284_v10 = vpop.f32.mrb[3].mxu1 }
 0x2c8   :  { %v2285_v11 = vadd.f32 %v2284_v10, %v2283_v9  ;;  %v3234_v9 = vmov 0.0|0.0   ;;  %v2780_v10 = vpack.c.bf16 %v887_v8, %v886_v7 }
 0x2c9   :  { %2779 = vmatprep.subr.bf16.mxu1 %v3234_v9  ;;  %2803 = vmatprep.subr.bf16.mxu0 %v3234_v9 }
 0x2ca   :  { %v540_v15 = vmul.f32 0.0078125, %v2285_v11  ;;  %v888_v11 = vld [vmem:[%s4053_s7 + $0x10] sm:$0xff] }
 0x2cc   :  { %v542_v16 = vsub.f32 %v540_v15, %v541_v14  ;;  %v889_v14 = vld [vmem:[%s4053_s7 + $0x18] sm:$0xff] }
 0x2cd   :  { %v2783_v15 = vpack.c.bf16 %v889_v14, %v888_v11 }
 0x2ce   :  { %v543_v17 = vadd.f32 1e-05, %v542_v16  ;;  %v890_v16 = vld [vmem:[%s4053_s7 + $0x20] sm:$0xff] }
 0x2d0   :  { %2952 = vrsqrt.f32 %v543_v17  ;;  %v891_v17 = vld [vmem:[%s4053_s7 + $0x28] sm:$0xff] }
 0x2da   :  { %v2953_v18 = vpop.eup %2952 }
 0x2db   :  { %2200 = vmatmul.mubr.msk.f32.vlgmr.msra.gmra.mrb[6].mxu1 %vm548_vm2, %v2953_v18  ;;  %v2786_v18 = vpack.c.bf16 %v891_v17, %v890_v16 }
 0x2dc   :  { %2781 = vmatpush3.bf16.msra.mxu1 %v2780_v10  ;;  %2448 = vmatprep.mubr.msk.f32.mxu1 %vm3235_vm3, %v3233_v2 }
 0x2dd   :  { %2782 = vmatprep.subr.bf16.mxu1 %v3234_v9 }
 0x2e0   :  { %2784 = vmatpush3.bf16.msra.mxu1 %v2783_v15 }
 0x2e1   :  { %2785 = vmatprep.subr.bf16.mxu1 %v3234_v9 }
 0x2e4   :  { %2787 = vmatpush3.bf16.msra.mxu1 %v2786_v18 }
 0x2e5   :  { %2788 = vmatprep.subr.bf16.mxu1 %v3234_v9 }
 0x37f   :  { %v623_v19 = vpop.f32.mrb[4].mxu1 }
 0x380   :  { %v625_v20 = vpop.f32.mrb[5].mxu1  ;;  %v705_v26 = vrot.slane %v623_v19, %v3603_v28 }
 0x381   :  { %v709_v31 = vrot.slane %v625_v20, %v3603_v28 }
 0x382   :  { %v710_v36 = vsub.f32 %v3616_v35, %v705_v26 }
 0x383   :  { %v711_v40 = vsub.f32 %v3618_v37, %v709_v31  ;;  %v892_v37 = vld [vmem:[%s4053_s7 + $0x30] sm:$0xff]  ;;  %s3238_s7 = smov 32  }
 0x384   :  { %v2789_v56 = vpack.c.bf16 %v893_v54, %v892_v37  ;;  %v1219_v31 = vld [vmem:[%s4055_s9 + $0x10] sm:$0xff]  ;;  %v1226_v54 = vld [vmem:[%s4055_s9 + $0x48] sm:$0xff] }
 0x385   :  { %v2860_v49 = vpack.c.bf16 %v1222_v32, %v1219_v31  ;;  %v1223_v37 = vld [vmem:[%s4055_s9 + $0x30] sm:$0xff] }
 0x386   :  { %2790 = vmatpush3.bf16.msra.mxu1 %v2789_v56  ;;  %v1247_v32 = vld [vmem:[%s4055_s9 + $0xf0] sm:$0xff] }
 0x387   :  { %2791 = vmatprep.subr.bf16.mxu1 %v3234_v9 }
 0x38a   :  { %2793 = vmatpush3.bf16.msra.mxu1 %v2792_v59 }
 0x38b   :  { %2794 = vmatprep.subr.bf16.mxu1 %v3234_v9 }
 0x38e   :  { %2796 = vmatpush3.bf16.msra.mxu1 %v2795_v62 }
 0x38f   :  { %2797 = vmatprep.subr.bf16.mxu1 %v3234_v9 }
 0x392   :  { %2799 = vmatpush3.bf16.msra.mxu1 %v2798_v4 }
 0x393   :  { %2800 = vmatprep.subr.bf16.mxu1 %v3234_v9 }
 0x396   :  { %2802 = vmatpush3.bf16.msra.mxu1 %v2801_v55 }
 0x397   :  { %2486 = vmatprep.subr.mxu1 %v3233_v2 }
 0x3ae   :  { %v697_v33 = vpop.f32.mrb[6].mxu1 }
 0x3af   :  { %v715_v38 = vrot.slane %v697_v33, %v3603_v28  ;;  %v699_v39 = vpop.f32.mrb[7].mxu1  ;;  %v1218_v33 = vld [vmem:[%s4055_s9 + $0x8] sm:$0xff] }
 0x3b0   :  { %v719_v41 = vrot.slane %v699_v39, %v3603_v28  ;;  %v2827_v39 = vpack.c.bf16 %v1221_v34, %v1218_v33  ;;  %v1249_v34 = vld [vmem:[%s4055_s9 + $0x100] sm:$0xff] }
 0x3b1   :  { %v720_v44 = vmul.f32 %v715_v38, %v710_v36 }
 0x3b2   :  { %v721_v46 = vmul.f32 %v719_v41, %v711_v40 }
 0x3b3   :  { %v740_v29 = vmul.f32 %v735_v27, %v720_v44 }
 0x3b4   :  { %v741_v48 = vmul.f32 %v739_v42, %v721_v46 }
 0x3b5   :  { %v760_v35 = vadd.f32 %v755_v45, %v740_v29  ;;  %v1220_v29 = vld [vmem:[%s4055_s9 + $0x18] sm:$0xff] }
 0x3b6   :  { %v761_v51 = vadd.f32 %v759_v47, %v741_v48  ;;  %v1217_v47 = vld [vmem:[%s4055_s9] sm:$0xff]  ;;  %v1224_v48 = vld [vmem:[%s4055_s9 + $0x38] sm:$0xff] }
 0x3b7   :  { %v762_v53 = vmax.f32 %v760_v35, 0.0  ;;  %v1227_v35 = vld [vmem:[%s4055_s9 + $0x50] sm:$0xff] }
 0x3b8   :  { %v763_v52 = vmax.f32 %v761_v51, 0.0  ;;  %v2829_v51 = vpack.c.bf16 %v1220_v29, %v1217_v47  ;;  %v1260_v29 = vld [vmem:[%s4055_s9 + $0x158] sm:$0xff] }
 0x3ba   :  { %865 = vmatprep.mubr.f32.mxu0 %v763_v52  ;;  %v2831_v52 = vpack.c.bf16 %v1227_v35, %v1224_v48  ;;  %v1263_v48 = vld [vmem:[%s4055_s9 + $0x170] sm:$0xff] }
 0x3bb   :  { %866 = vmatmul.mubr.f32.vlgmr.msra.gmra.mrb[2].mxu0 %v762_v53  ;;  %v2855_v35 = vpack.c.bf16 %v1263_v48, %v1260_v29 }
 0x3bc   :  { %2805 = vmatpush3.bf16.msra.mxu0 %v2780_v10  ;;  %2483 = vmatprep.mubr.msk.f32.mxu0 %vm3235_vm3, %v3233_v2 }
 0x3bd   :  { %2806 = vmatprep.subr.bf16.mxu0 %v3234_v9 }
 0x3c0   :  { %2808 = vmatpush3.bf16.msra.mxu0 %v2783_v15 }
 0x3c1   :  { %2809 = vmatprep.subr.bf16.mxu0 %v3234_v9 }
 0x3c4   :  { %2811 = vmatpush3.bf16.msra.mxu0 %v2786_v18 }
 0x3c5   :  { %2812 = vmatprep.subr.bf16.mxu0 %v3234_v9 }
 0x3c8   :  { %2814 = vmatpush3.bf16.msra.mxu0 %v2789_v56  ;;  %v2833_v56 = vpack.c.bf16 %v1226_v54, %v1223_v37  ;;  %v1261_v37 = vld [vmem:[%s4055_s9 + $0x160] sm:$0xff]  ;;  %v1264_v54 = vld [vmem:[%s4055_s9 + $0x178] sm:$0xff] }
 0x3c9   :  { %2815 = vmatprep.subr.bf16.mxu0 %v3234_v9 }
 0x3cc   :  { %2817 = vmatpush3.bf16.msra.mxu0 %v2792_v59  ;;  %v2863_v59 = vpack.c.bf16 %v1228_v58, %v1225_v57 }
 0x3cd   :  { %2818 = vmatprep.subr.bf16.mxu0 %v3234_v9 }
 0x3d0   :  { %2820 = vmatpush3.bf16.msra.mxu0 %v2795_v62  ;;  %v2835_v62 = vpack.c.bf16 %v1233_v61, %v1230_v60 }
 0x3d1   :  { %2821 = vmatprep.subr.bf16.mxu0 %v3234_v9 }
 0x3d4   :  { %2823 = vmatpush3.bf16.msra.mxu0 %v2798_v4  ;;  %v2837_v4 = vpack.c.bf16 %v1232_v3, %v1229_v63  ;;  %v1209_v63 = vrot.slane %v3741_v0, %v3671_v21 }
 0x3d5   :  { %2824 = vmatprep.subr.bf16.mxu0 %v3234_v9 }
 0x3d8   :  { %2826 = vmatpush3.bf16.msra.mxu0 %v2801_v55  ;;  %v2866_v55 = vpack.c.bf16 %v1234_v50, %v1231_v43  ;;  %v1214_v43 = vrot.slane %v3741_v0, %v3675_v24  ;;  %v1426_v0 = vld [vmem:[%s4057_s11 + $0x18] sm:$0xff] }
 0x3d9   :  { %2859 = vmatprep.subr.bf16.mxu0 %v3234_v9 }
 0x48e   :  { %v2318_v1 = vpop.f32.mrb[2].mxu0 }
 0x48f   :  { %v2319_v13 = vpop.f32.mrb[3].mxu0 }
 0x490   :  { %v2320_v22 = vadd.f32 %v2319_v13, %v2318_v1  ;;  %v1236_v1 = vld [vmem:[%s4055_s9 + $0x98] sm:$0xff]  ;;  %v1235_v13 = vld [vmem:[%s4055_s9 + $0x90] sm:$0xff] }
 0x492   :  { %v3745_v5 = vadd.f32 %v2320_v22, %v800_v12  ;;  %v1239_v12 = vld [vmem:[%s4055_s9 + $0xb0] sm:$0xff] }
 0x493   :  { %v2839_v22 = vpack.c.bf16 %v1239_v12, %v1236_v1  ;;  %v1424_v1 = vld [vmem:[%s4057_s11 + $0x8] sm:$0xff] }
 0x494   :  { %v871_v6 = vsel %vm336_vm0, %v3745_v5, 0.0  ;;  %v878_v7 = vmul.f32 %v3745_v5, %v3745_v5 }
 0x495   :  { %v872_v8 = vrot.slane %v871_v6, 4 }
 0x496   :  { %v879_v10 = vsel %vm336_vm0, %v878_v7, 0.0  ;;  %v1237_v7 = vld [vmem:[%s4055_s9 + $0xa0] sm:$0xff] }
 0x497   :  { %v873_v11 = vadd.f32 %v872_v8, %v871_v6  ;;  %v880_v14 = vrot.slane %v879_v10, 4  ;;  %v1238_v6 = vld [vmem:[%s4055_s9 + $0xa8] sm:$0xff]  ;;  %v1240_v8 = vld [vmem:[%s4055_s9 + $0xb8] sm:$0xff] }
 0x499   :  { %v874_v15 = vrot.slane %v873_v11, 2  ;;  %v881_v16 = vadd.f32 %v880_v14, %v879_v10  ;;  %v2841_v10 = vpack.c.bf16 %v1238_v6, %v1235_v13  ;;  %v1242_v14 = vld [vmem:[%s4055_s9 + $0xc8] sm:$0xff] }
 0x49b   :  { %v875_v17 = vadd.f32 %v874_v15, %v873_v11  ;;  %v882_v18 = vrot.slane %v881_v16, 2  ;;  %v2869_v11 = vpack.c.bf16 %v1240_v8, %v1237_v7  ;;  %v1245_v15 = vld [vmem:[%s4055_s9 + $0xe0] sm:$0xff] }
 0x49d   :  { %v876_v19 = vrot.slane %v875_v17, 1  ;;  %v883_v20 = vadd.f32 %v882_v18, %v881_v16  ;;  %v1241_v16 = vld [vmem:[%s4055_s9 + $0xc0] sm:$0xff]  ;;  %v1244_v18 = vld [vmem:[%s4055_s9 + $0xd8] sm:$0xff] }
 0x49f   :  { %v877_v23 = vadd.f32 %v876_v19, %v875_v17  ;;  %v884_v25 = vrot.slane %v883_v20, 1  ;;  %v2843_v17 = vpack.c.bf16 %v1245_v15, %v1242_v14  ;;  %v1243_v19 = vld [vmem:[%s4055_s9 + $0xd0] sm:$0xff]  ;;  %v3949_v14 = vld [vmem:[#allocation13] ss:$0 sm:$0xff] }
 0x4a1   :  { %2449 = vmatmul.mubr.f32.vlgmr.msra.gmra.mrb[8].mxu1 %v877_v23  ;;  %v885_v26 = vadd.f32 %v884_v25, %v883_v20  ;;  %v1246_v20 = vld [vmem:[%s4055_s9 + $0xe8] sm:$0xff]  ;;  %v1248_v23 = vld [vmem:[%s4055_s9 + $0xf8] sm:$0xff]  ;;  %v1251_v25 = vld [vmem:[%s4055_s9 + $0x110] sm:$0xff] }
 0x4a2   :  { %2488 = vmatprep.mubr.msk.f32.mxu1 %vm3235_vm3, %v3233_v2  ;;  %2487 = vmatpush3.msra.mxu1 %v1048_v30  ;;  %v2847_v31 = vpack.c.bf16 %v1251_v25, %v1248_v23 }
 0x4a3   :  { %2484 = vmatmul.mubr.f32.vlgmr.msra.gmra.mrb[4].mxu0 %v885_v26  ;;  %2491 = vmatprep.subr.mxu1 %v3233_v2  ;;  %v2845_v26 = vpack.c.bf16 %v1244_v18, %v1241_v16  ;;  %v3953_v18 = vld [vmem:[#allocation11] sm:$0x7] }
 0x4a4   :  { %2528 = vmatprep.mubr.msk.f32.mxu0 %vm3235_vm3, %v3233_v2  ;;  %2861 = vmatpush3.bf16.msra.mxu0 %v2860_v49  ;;  %v1250_v49 = vld [vmem:[%s4055_s9 + $0x108] sm:$0xff] }
 0x4a5   :  { %2862 = vmatprep.subr.bf16.mxu0 %v3234_v9  ;;  %v2849_v33 = vpack.c.bf16 %v1250_v49, %v1247_v32 }
 0x4a8   :  { %2864 = vmatpush3.bf16.msra.mxu0 %v2863_v59 }
 0x4a9   :  { %2865 = vmatprep.subr.bf16.mxu0 %v3234_v9 }
 0x4ac   :  { %2867 = vmatpush3.bf16.msra.mxu0 %v2866_v55  ;;  %v1423_v55 = vld [vmem:[%s4057_s11] sm:$0xff] }
 0x4ad   :  { %2868 = vmatprep.subr.bf16.mxu0 %v3234_v9  ;;  %v2884_v12 = vpack.c.bf16 %v1424_v1, %v1423_v55 }
 0x4b0   :  { %2870 = vmatpush3.bf16.msra.mxu0 %v2869_v11 }
 0x4b1   :  { %2871 = vmatprep.subr.bf16.mxu0 %v3234_v9 }
 0x574   :  { %v968_v36 = vpop.f32.mrb[8].mxu1 }
 0x575   :  { %v972_v38 = vmul.f32 0.03125, %v968_v36  ;;  %v2450_v27 = vpop.f32.mrb[9].mxu1  ;;  %v1252_v36 = vld [vmem:[%s4055_s9 + $0x118] sm:$0xff] }
 0x576   :  { %v1039_v40 = vpop.f32.mrb[4].mxu0  ;;  %v1254_v27 = vld [vmem:[%s4055_s9 + $0x128] sm:$0xff] }
 0x577   :  { %v1044_v41 = vmul.f32 %v972_v38, %v972_v38  ;;  %v1043_v42 = vmul.f32 0.03125, %v1039_v40  ;;  %v2485_v44 = vpop.f32.mrb[5].mxu0  ;;  %2489 = vmatmul.mubr.msk.f32.vlgmr.msra.gmra.mrb[10].mxu1 %vm1049_vm4, %v972_v38  ;;  %v2875_v38 = vpack.c.bf16 %v1252_v36, %v1249_v34 }
 0x578   :  { %2492 = vmatpush3.msra.mxu1 %v1048_v30  ;;  %2493 = vmatprep.mubr.msk.f32.mxu1 %vm3235_vm3, %v3233_v2  ;;  %v2872_v30 = vpack.c.bf16 %v1246_v20, %v1243_v19  ;;  %v1270_v19 = vrot.slane %v3953_v18, %v3603_v28 }
 0x579   :  { %v1045_v45 = vsub.f32 %v1043_v42, %v1044_v41  ;;  %2828 = vmatprep.subr.bf16.mxu1 %v2827_v39  ;;  %v1257_v39 = vld [vmem:[%s4055_s9 + $0x140] sm:$0xff]  ;;  %v1256_v42 = vld [vmem:[%s4055_s9 + $0x138] sm:$0xff] }
 0x57a   :  { %2873 = vmatpush3.bf16.msra.mxu0 %v2872_v30  ;;  %v2851_v40 = vpack.c.bf16 %v1257_v39, %v1254_v27  ;;  %v1253_v41 = vld [vmem:[%s4055_s9 + $0x120] sm:$0xff] }
 0x57b   :  { %v1046_v46 = vadd.f32 1e-05, %v1045_v45  ;;  %2874 = vmatprep.subr.bf16.mxu0 %v3234_v9  ;;  %v2853_v44 = vpack.c.bf16 %v1256_v42, %v1253_v41  ;;  %v1255_v45 = vld [vmem:[%s4055_s9 + $0x130] sm:$0xff] }
 0x57d   :  { %2954 = vrsqrt.f32 %v1046_v46  ;;  %v1258_v46 = vld [vmem:[%s4055_s9 + $0x148] sm:$0xff] }
 0x57e   :  { %2876 = vmatpush3.bf16.msra.mxu0 %v2875_v38  ;;  %v2878_v47 = vpack.c.bf16 %v1258_v46, %v1255_v45 }
 0x57f   :  { %2877 = vmatprep.subr.bf16.mxu0 %v3234_v9 }
 0x582   :  { %2879 = vmatpush3.bf16.msra.mxu0 %v2878_v47 }
 0x583   :  { %2880 = vmatprep.subr.bf16.mxu0 %v3234_v9 }
 0x587   :  { %v2955_v53 = vpop.eup %2954 }
 0x588   :  { %2494 = vmatmul.mubr.msk.f32.vlgmr.msra.gmra.mrb[12].mxu1 %vm1049_vm4, %v2955_v53 }
 0x589   :  { %2830 = vmatpush1.bf16.msra.mxu1 %v2829_v51  ;;  %1346 = vmatprep.mubr.f32.mxu1 %v3233_v2  ;;  %v1259_v51 = vld [vmem:[%s4055_s9 + $0x150] sm:$0xff] }
 0x58a   :  { %2832 = vmatprep.subr.bf16.mxu1 %v2831_v52  ;;  %v1262_v52 = vld [vmem:[%s4055_s9 + $0x168] sm:$0xff] }
 0x58b   :  { %v2857_v53 = vpack.c.bf16 %v1262_v52, %v1259_v51 }
 0x58d   :  { %2834 = vmatpush1.bf16.msra.mxu1 %v2833_v56  ;;  %v2881_v56 = vpack.c.bf16 %v1264_v54, %v1261_v37  ;;  %v1274_v37 = vrot.slane %v3953_v18, %v3671_v21 }
 0x58e   :  { %2836 = vmatprep.subr.bf16.mxu1 %v2835_v62 }
 0x58f   :  { %2882 = vmatpush3.bf16.msra.mxu0 %v2881_v56 }
 0x590   :  { %2901 = vmatprep.subr.bf16.mxu0 %v3234_v9 }
 0x591   :  { %2838 = vmatpush1.bf16.msra.mxu1 %v2837_v4 }
 0x592   :  { %2840 = vmatprep.subr.bf16.mxu1 %v2839_v22  ;;  %v1425_v22 = vld [vmem:[%s4057_s11 + $0x10] sm:$0xff]  ;;  %s3236_s11 = smov 64  }
 0x593   :  { %v2887_v6 = vpack.c.bf16 %v1426_v0, %v1425_v22 }
 0x595   :  { %2842 = vmatpush1.bf16.msra.mxu1 %v2841_v10 }
 0x596   :  { %2844 = vmatprep.subr.bf16.mxu1 %v2843_v17 }
 0x599   :  { %2846 = vmatpush1.bf16.msra.mxu1 %v2845_v26 }
 0x59a   :  { %2848 = vmatprep.subr.bf16.mxu1 %v2847_v31 }
 0x59d   :  { %2850 = vmatpush1.bf16.msra.mxu1 %v2849_v33 }
 0x59e   :  { %2852 = vmatprep.subr.bf16.mxu1 %v2851_v40 }
 0x5a1   :  { %2854 = vmatpush1.bf16.msra.mxu1 %v2853_v44 }
 0x5a2   :  { %2856 = vmatprep.subr.bf16.mxu1 %v2855_v35 }
 0x5a5   :  { %2858 = vmatpush1.bf16.msra.mxu1 %v2857_v53 }
 0x5a6   :  { %2883 = vmatprep.subr.bf16.mxu1 %v3234_v9 }
 0x64a   :  { %v1119_v57 = vpop.f32.mrb[10].mxu1 }
 0x64b   :  { %v2490_v58 = vpop.f32.mrb[11].mxu1  ;;  %v1199_v59 = vrot.slane %v1119_v57, %v3603_v28 }
 0x64d   :  { %v1200_v61 = vsub.f32 %v3745_v5, %v1199_v59 }
 0x65b   :  { %v1192_v60 = vpop.f32.mrb[12].mxu1 }
 0x65c   :  { %v1204_v62 = vrot.slane %v1192_v60, %v3603_v28  ;;  %v2495_v3 = vpop.f32.mrb[13].mxu1 }
 0x65e   :  { %v1205_v4 = vmul.f32 %v1204_v62, %v1200_v61 }
 0x660   :  { %v1210_v50 = vmul.f32 %v1209_v63, %v1205_v4 }
 0x662   :  { %v1215_v5 = vadd.f32 %v1214_v43, %v1210_v50 }
 0x664   :  { %v1216_v13 = vmax.f32 %v1215_v5, 0.0 }
 0x666   :  { %1347 = vmatmul.mubr.f32.vlgmr.msra.gmra.mrb[14].mxu1 %v1216_v13  ;;  %2529 = vmatmul.mubr.f32.vlgmr.msra.gmra.mrb[6].mxu0 %v1216_v13 }
 0x667   :  { %2885 = vmatpush3.bf16.msra.mxu1 %v2884_v12  ;;  %2539 = vmatprep.mubr.msk.f32.mxu1 %vm3235_vm3, %v3233_v2 }
 0x668   :  { %2886 = vmatprep.subr.bf16.mxu1 %v3234_v9  ;;  %2903 = vmatpush3.bf16.msra.mxu0 %v2884_v12 }
 0x669   :  { %2904 = vmatprep.subr.bf16.mxu0 %v3234_v9  ;;  %2572 = vmatprep.mubr.msk.f32.mxu0 %vm3235_vm3, %v3233_v2 }
 0x66b   :  { %2888 = vmatpush3.bf16.msra.mxu1 %v2887_v6 }
 0x66c   :  { %2889 = vmatprep.subr.bf16.mxu1 %v3234_v9  ;;  %2906 = vmatpush3.bf16.msra.mxu0 %v2887_v6 }
 0x66d   :  { %2913 = vmatprep.subr.bf16.mxu0 %v3234_v9 }
 0x66e   :  { %2540 = vmatmul.mubr.f32.vlgmr.msra.gmra.mrb[16].mxu1 %v3233_v2 }
 0x66f   :  { %2891 = vmatpush3.bf16.msra.mxu1 %v2884_v12  ;;  %2550 = vmatprep.mubr.msk.f32.mxu1 %vm3235_vm3, %v3233_v2 }
 0x670   :  { %2892 = vmatprep.subr.bf16.mxu1 %v3234_v9 }
 0x673   :  { %2894 = vmatpush3.bf16.msra.mxu1 %v2887_v6 }
 0x674   :  { %2895 = vmatprep.subr.bf16.mxu1 %v3234_v9 }
 0x739   :  { %v1348_v7 = vpop.f32.mrb[14].mxu1  ;;  %v3947_v8 = vpop.f32.mrb[6].mxu0 }
 0x73a   :  { %v1350_v10 = vpop.f32.mrb[15].mxu1  ;;  %v2530_v11 = vpop.f32.mrb[7].mxu0  ;;  %v1349_v20 = vadd.f32 %v1348_v7, %v1270_v19 }
 0x73b   :  { %v1351_v54 = vadd.f32 %v1350_v10, %v1274_v37  ;;  %v1278_v11 = vrot.slane %v3953_v18, %v3675_v24 }
 0x741   :  { %v1504_v15 = vpop.f32.mrb[16].mxu1 }
 0x742   :  { %v1505_v16 = vadd.f32 %v3949_v14, %v1504_v15  ;;  %v2541_v17 = vpop.f32.mrb[17].mxu1  ;;  %v1420_v15 = vadd.f32 %v3947_v8, %v1278_v11  ;;  %v2099_v11 = vld [vmem:[#allocation14 + $0x10] sm:$0xff] }
 0x744   :  { %1516 = vrot.lane.b32.xlu0 %v1505_v16, %s3236_s11  ;;  %v1508_v23 = vadd.f32 %v1505_v16, %v1349_v20 }
 0x746   :  { %v2204_v25 = vmul.f32 -1.442695, %v1508_v23 }
 0x748   :  { %2956 = vpow2.f32 %v2204_v25 }
 0x752   :  { %v2957_v26 = vpop.eup %2956 }
 0x753   :  { %v1512_v30 = vadd.f32 1.0, %v2957_v26 }
 0x755   :  { %2958 = vrcp.f32 %v1512_v30 }
 0x75f   :  { %v2959_v31 = vpop.eup %2958 }
 0x760   :  { %v1526_v28 = vsub.f32 1.0, %v2959_v31  ;;  %v1532_v27 = vmul.f32 0.0, %v2959_v31 }
 0x7b6   :  { %v1517_v32 = vpop.permute.xlu0 %1516 }
 0x7b7   :  { %v1519_v49 = vmul.f32 %v2959_v31, %v1517_v32 }
 0x7b9   :  { %1521 = vrot.lane.b32.xlu0 %v1519_v49, %s3236_s11 }
 0x82b   :  { %v1522_v33 = vpop.permute.xlu0 %1521 }
 0x82c   :  { %v1524_v34 = vadd.f32 %v1522_v33, %v1349_v20 }
 0x82e   :  { %2960 = vtanh.f32 %v1524_v34 }
 0x838   :  { %v2961_v36 = vpop.eup %2960 }
 0x839   :  { %1528 = vrot.lane.b32.xlu1 %v2961_v36, %s3237_s15 }
 0x8ab   :  { %v1529_v38 = vpop.permute.xlu1 %1528 }
 0x8ac   :  { %v1531_v39 = vmul.f32 %v1529_v38, %v1526_v28 }
 0x8ae   :  { %v1533_v40 = vadd.f32 %v1532_v27, %v1531_v39 }
 0x8b0   :  { %1535 = vrot.lane.b32.xlu1 %v1533_v40, %s3237_s15 }
 0x922   :  { %v1536_v41 = vpop.permute.xlu1 %1535 }
 0x923   :  { %2551 = vmatmul.mubr.msk.f32.vlgmr.msra.gmra.mrb[18].mxu1 %vm1434_vm5, %v1536_v41 }
 0x924   :  { %2897 = vmatpush3.bf16.msra.mxu1 %v2884_v12  ;;  %2561 = vmatprep.mubr.msk.f32.mxu1 %vm3235_vm3, %v3233_v2 }
 0x925   :  { %2898 = vmatprep.subr.bf16.mxu1 %v3234_v9 }
 0x928   :  { %2900 = vmatpush3.bf16.msra.mxu1 %v2887_v6 }
 0x929   :  { %2907 = vmatprep.subr.bf16.mxu1 %v3234_v9 }
 0x9f6   :  { %v1605_v42 = vpop.f32.mrb[18].mxu1 }
 0x9f7   :  { %v1606_v44 = vadd.f32 %v3949_v14, %v1605_v42  ;;  %v2552_v45 = vpop.f32.mrb[19].mxu1  ;;  %v1856_v42 = vld [vmem:[%s4059_s13 + $0x8] sm:$0xff] }
 0x9f9   :  { %1627 = vrot.lane.b32.xlu1 %v1606_v44, %s3238_s7  ;;  %1610 = vrot.lane.b32.xlu0 %v1606_v44, %s3237_s15  ;;  %v1857_v44 = vld [vmem:[%s4059_s13 + $0x10] sm:$0xff] }
 0xa6b   :  { %v1611_v46 = vpop.permute.xlu0 %1610  ;;  %v1628_v52 = vpop.permute.xlu1 %1627 }
 0xa6c   :  { %v1613_v47 = vadd.f32 %v1611_v46, %v1349_v20  ;;  %v1620_v59 = vadd.f32 %v1611_v46, %v1351_v54  ;;  %v1858_v46 = vld [vmem:[%s4059_s13 + $0x18] sm:$0xff] }
 0xa6e   :  { %v2206_v29 = vmul.f32 -1.442695, %v1613_v47  ;;  %v2207_v60 = vmul.f32 -1.442695, %v1620_v59  ;;  %v2911_v47 = vpack.c.bf16 %v1858_v46, %v1857_v44 }
 0xa70   :  { %2962 = vpow2.f32 %v2206_v29 }
 0xa7a   :  { %v2963_v48 = vpop.eup %2962 }
 0xa7b   :  { %v1617_v35 = vadd.f32 1.0, %v2963_v48  ;;  %v1934_v48 = vld [vmem:[%s4060_s14] sm:$0xff] }
 0xa7d   :  { %2964 = vrcp.f32 %v1617_v35  ;;  %v1935_v35 = vld [vmem:[%s4060_s14 + $0x8] sm:$0xff] }
 0xa87   :  { %v2965_v51 = vpop.eup %2964 }
 0xa88   :  { %v1630_v53 = vmul.f32 %v2965_v51, %v1628_v52  ;;  %v1936_v51 = vld [vmem:[%s4060_s14 + $0x10] sm:$0xff]  ;;  %v2914_v52 = vpack.c.bf16 %v1935_v35, %v1934_v48 }
 0xa8a   :  { %1632 = vrot.lane.b32.xlu0 %v1630_v53, %s3236_s11  ;;  %v1937_v53 = vld [vmem:[%s4060_s14 + $0x18] sm:$0xff]  ;;  %s3239_s14 = smov [#allocation17]  }
 0xa8b   :  { %v2917_v37 = vpack.c.bf16 %v1937_v53, %v1936_v51  ;;  %s2181_s30 = sshll.u32 %s3239_s14, 4  ;;  %s2182_s30 = int_to_ptr.vmem [resolvable:$true] %s2181_s30 }
 0xa8c   :  { %s3186_s12 = scalar_lea.vmem %s2182_s30, 32  ;;  %p3191_p3 = scmp.lt.s32.totalorder %s2182_s30, %s2182_s30 }
 0xa8d   :  { %p3187_p2 = scmp.ne.s32.totalorder %s2182_s30, %s3186_s12  ;;  %p3192_p4 = scmp.lt.s32.totalorder %s3186_s12, %s3186_s12 }
 0xa8f   :  { %p3193_p5 = por %p3192_p4, %p3191_p3 }
 0xa91   :  { %p3194_p6 = pnand %p3193_p5, %p3187_p2 }
 0xafc   :  { %v1633_v56 = vpop.permute.xlu0 %1632 }
 0xafd   :  { %v1635_v57 = vadd.f32 %v1633_v56, %v1351_v54 }
 0xaff   :  { %2966 = vtanh.f32 %v1635_v57 }
 0xb00   :  { %2968 = vpow2.f32 %v2207_v60 }
 0xb09   :  { %v2967_v58 = vpop.eup %2966 }
 0xb0a   :  { %1639 = vrot.lane.b32.xlu1 %v2967_v58, %s3237_s15  ;;  %v2969_v61 = vpop.eup %2968 }
 0xb0b   :  { %v1624_v62 = vadd.f32 1.0, %v2969_v61 }
 0xb0d   :  { %2970 = vrcp.f32 %v1624_v62 }
 0xb17   :  { %v2971_v63 = vpop.eup %2970 }
 0xb18   :  { %v1637_v3 = vsub.f32 1.0, %v2971_v63  ;;  %v1644_v43 = vmul.f32 %v2971_v63, %v1536_v41  ;;  %v1855_v41 = vld [vmem:[%s4059_s13] sm:$0xff] }
 0xb19   :  { %v2908_v45 = vpack.c.bf16 %v1856_v42, %v1855_v41 }
 0xb7c   :  { %v1640_v4 = vpop.permute.xlu1 %1639 }
 0xb7d   :  { %v1642_v50 = vmul.f32 %v1640_v4, %v1637_v3 }
 0xb7f   :  { %v1645_v55 = vadd.f32 %v1644_v43, %v1642_v50  ;;  %v2018_v50 = vld [vmem:[#allocation16] sm:$0xff] }
 0xb81   :  { %2562 = vmatmul.mubr.msk.f32.vlgmr.msra.gmra.mrb[20].mxu1 %vm1434_vm5, %v1645_v55 }
 0xb82   :  { %2583 = vmatprep.mubr.msk.f32.mxu1 %vm3235_vm3, %v3233_v2  ;;  %2909 = vmatpush3.bf16.msra.mxu1 %v2908_v45 }
 0xb83   :  { %2910 = vmatprep.subr.bf16.mxu1 %v3234_v9 }
 0xb86   :  { %2912 = vmatpush3.bf16.msra.mxu1 %v2911_v47 }
 0xb87   :  { %2919 = vmatprep.subr.bf16.mxu1 %v3234_v9 }
 0xc54   :  { %v1715_v21 = vpop.f32.mrb[20].mxu1 }
 0xc55   :  { %v1716_v1 = vadd.f32 %v3949_v14, %v1715_v21  ;;  %v2563_v5 = vpop.f32.mrb[21].mxu1  ;;  %v2020_v21 = vld [vmem:[#allocation16 + $0x10] sm:$0xff] }
 0xc56   :  { %v2021_v5 = vld [vmem:[#allocation16 + $0x18] sm:$0xff] }
 0xc57   :  { %1720 = vrot.lane.b32.xlu0 %v1716_v1, %s3236_s11 }
 0xcc9   :  { %v1721_v12 = vpop.permute.xlu0 %1720 }
 0xcca   :  { %v1723_v13 = vadd.f32 %v1721_v12, %v1351_v54  ;;  %v2923_v12 = vpack.c.bf16 %v2021_v5, %v2020_v21 }
 0xccc   :  { %v2209_v22 = vmul.f32 -1.442695, %v1723_v13 }
 0xcce   :  { %2972 = vpow2.f32 %v2209_v22 }
 0xcd8   :  { %v2973_v0 = vpop.eup %2972 }
 0xcd9   :  { %v1727_v6 = vadd.f32 1.0, %v2973_v0 }
 0xcdb   :  { %2974 = vrcp.f32 %v1727_v6  ;;  %v2097_v6 = vld [vmem:[#allocation14] sm:$0xff] }
 0xce5   :  { %v2975_v7 = vpop.eup %2974 }
 0xce6   :  { %v1730_v10 = vmul.f32 %v2975_v7, %v1716_v1  ;;  %v1737_v23 = vsub.f32 1.0, %v2975_v7 }
 0xce8   :  { %1732 = vrot.lane.b32.xlu1 %v1730_v10, %s3236_s11 }
 0xcec   :  { %1743 = vrot.lane.b32.xlu1 %v1645_v55, %s3237_s15  ;;  %v2019_v55 = vld [vmem:[#allocation16 + $0x8] sm:$0xff] }
 0xced   :  { %v2920_v1 = vpack.c.bf16 %v2019_v55, %v2018_v50 }
 0xd5a   :  { %v1733_v16 = vpop.permute.xlu1 %1732 }
 0xd5b   :  { %v1735_v17 = vadd.f32 %v1733_v16, %v1420_v15 }
 0xd5d   :  { %2976 = vtanh.f32 %v1735_v17 }
 0xd5e   :  { %v1744_v20 = vpop.permute.xlu1 %1743 }
 0xd5f   :  { %v1746_v26 = vmul.f32 %v2975_v7, %v1744_v20  ;;  %v2098_v7 = vld [vmem:[#allocation14 + $0x8] sm:$0xff] }
 0xd60   :  { %v2926_v10 = vpack.c.bf16 %v2098_v7, %v2097_v6 }
 0xd67   :  { %v2977_v19 = vpop.eup %2976 }
 0xd68   :  { %1739 = vrot.lane.b32.xlu0 %v2977_v19, %s3237_s15 }
 0xdda   :  { %v1740_v25 = vpop.permute.xlu0 %1739 }
 0xddb   :  { %v1742_v30 = vmul.f32 %v1740_v25, %v1737_v23 }
 0xddd   :  { %v1747_v31 = vadd.f32 %v1746_v26, %v1742_v30 }
 0xddf   :  { %1749 = vrot.lane.b32.xlu0 %v1747_v31, %s3238_s7 }
 0xe51   :  { %v1750_v32 = vpop.permute.xlu0 %1749 }
 0xe52   :  { %2573 = vmatmul.mubr.msk.f32.vlgmr.msra.gmra.mrb[8].mxu0 %vm1434_vm5, %v1750_v32 }
 0xe53   :  { %2594 = vmatprep.mubr.msk.f32.mxu0 %vm3235_vm3, %v3233_v2  ;;  %2915 = vmatpush3.bf16.msra.mxu0 %v2914_v52 }
 0xe54   :  { %2916 = vmatprep.subr.bf16.mxu0 %v3234_v9 }
 0xe57   :  { %2918 = vmatpush3.bf16.msra.mxu0 %v2917_v37 }
 0xe58   :  { %2925 = vmatprep.subr.bf16.mxu0 %v3234_v9 }
 0xf25   :  { %v1819_v24 = vpop.f32.mrb[8].mxu0 }
 0xf26   :  { %v1820_v8 = vadd.f32 %v3949_v14, %v1819_v24  ;;  %v2574_v18 = vpop.f32.mrb[9].mxu0 }
 0xf28   :  { %1834 = vrot.lane.b32.xlu0 %v1820_v8, %s3237_s15  ;;  %1824 = vrot.lane.b32.xlu1 %v1820_v8, %s3238_s7 }
 0xf9a   :  { %v1825_v49 = vpop.permute.xlu1 %1824  ;;  %v1835_v27 = vpop.permute.xlu0 %1834 }
 0xf9b   :  { %v1827_v33 = vadd.f32 %v1825_v49, %v1420_v15 }
 0xf9d   :  { %v2211_v34 = vmul.f32 -1.442695, %v1827_v33 }
 0xf9f   :  { %2978 = vpow2.f32 %v2211_v34 }
 0xfa9   :  { %v2979_v36 = vpop.eup %2978 }
 0xfaa   :  { %v1831_v28 = vadd.f32 1.0, %v2979_v36 }
 0xfac   :  { %2980 = vrcp.f32 %v1831_v28 }
 0xfb6   :  { %v2981_v38 = vpop.eup %2980 }
 0xfb7   :  { %v1837_v39 = vmul.f32 %v2981_v38, %v1835_v27  ;;  %v1844_v56 = vsub.f32 1.0, %v2981_v38 }
 0xfb9   :  { %1839 = vrot.lane.b32.xlu1 %v1837_v39, %s3236_s11 }
 0xfbd   :  { %1850 = vrot.lane.b32.xlu1 %v1747_v31, %s3237_s15 }
0x102b   :  { %v1840_v14 = vpop.permute.xlu1 %1839 }
0x102c   :  { %v1842_v40 = vadd.f32 %v1840_v14, %v1420_v15  ;;  %v2100_v15 = vld [vmem:[#allocation14 + $0x18] sm:$0xff] }
0x102d   :  { %v2929_v16 = vpack.c.bf16 %v2100_v15, %v2099_v11 }
0x102e   :  { %2982 = vtanh.f32 %v1842_v40 }
0x102f   :  { %v1851_v54 = vpop.permute.xlu1 %1850 }
0x1030   :  { %v1853_v58 = vmul.f32 %v2981_v38, %v1851_v54 }
0x1038   :  { %v2983_v29 = vpop.eup %2982 }
0x1039   :  { %1846 = vrot.lane.b32.xlu0 %v2983_v29, %s3237_s15 }
0x10ab   :  { %v1847_v57 = vpop.permute.xlu0 %1846 }
0x10ac   :  { %v1849_v59 = vmul.f32 %v1847_v57, %v1844_v56 }
0x10ae   :  { %v1854_v60 = vadd.f32 %v1853_v58, %v1849_v59 }
0x10b0   :  { %1860 = vrot.lane.b32.xlu0 %v1854_v60, %s3236_s11 }
0x1122   :  { %v1861_v61 = vpop.permute.xlu0 %1860 }
0x1123   :  { %2584 = vmatmul.mubr.msk.f32.vlgmr.msra.gmra.mrb[22].mxu1 %vm1434_vm5, %v1861_v61 }
0x1124   :  { %2605 = vmatprep.mubr.msk.f32.mxu1 %vm3235_vm3, %v3233_v2  ;;  %2921 = vmatpush3.bf16.msra.mxu1 %v2920_v1 }
0x1125   :  { %2922 = vmatprep.subr.bf16.mxu1 %v3234_v9 }
0x1128   :  { %2924 = vmatpush3.bf16.msra.mxu1 %v2923_v12 }
0x11f6   :  { %v1930_v62 = vpop.f32.mrb[22].mxu1 }
0x11f7   :  { %v2585_v63 = vpop.f32.mrb[23].mxu1  ;;  %2595 = vmatmul.mubr.msk.f32.vlgmr.msra.gmra.mrb[10].mxu0 %vm1434_vm5, %v1930_v62 }
0x11f8   :  { %2616 = vmatprep.mubr.msk.f32.mxu0 %vm3235_vm3, %v3233_v2  ;;  %2927 = vmatpush3.bf16.msra.mxu0 %v2926_v10 }
0x11f9   :  { %2928 = vmatprep.subr.bf16.mxu0 %v3234_v9 }
0x11fc   :  { %2930 = vmatpush3.bf16.msra.mxu0 %v2929_v16 }
0x12ca   :  { %v2007_v3 = vpop.f32.mrb[10].mxu0 }
0x12cb   :  { %v2596_v4 = vpop.f32.mrb[11].mxu0  ;;  %v2012_v43 = vsel %vm2011_vm6, %v2007_v3, -inf }
0x12cc   :  { %2013 = vmax.xlane.f32.xlu1 %v2012_v43 }
0x1359   :  { %v2014_v13 = vpop.xlane.xlu1 %2013 }
0x135a   :  { %v2015_v22 = vsub.f32 %v2007_v3, %v2014_v13 }
0x135c   :  { %v2016_v0 = vmul.f32 1.442695, %v2015_v22 }
0x135e   :  { %2984 = vpow2.f32 %v2016_v0 }
0x1368   :  { %v2985_v2 = vpop.eup %2984 }
0x1369   :  { %2606 = vmatmul.mubr.msk.f32.vlgmr.msra.gmra.mrb[24].mxu1 %vm1434_vm5, %v2985_v2 }
0x143c   :  { %v2091_v17 = vpop.f32.mrb[24].mxu1 }
0x143d   :  { %2986 = vrcp.f32 %v2091_v17  ;;  %v2607_v19 = vpop.f32.mrb[25].mxu1 }
0x1447   :  { %v2987_v20 = vpop.eup %2986 }
0x1448   :  { %v2096_v23 = vmul.f32 %v2987_v20, %v2985_v2 }
0x144a   :  { %2617 = vmatmul.mubr.msk.f32.vlgmr.msra.gmra.mrb[12].mxu0 %vm1434_vm5, %v2096_v23 }
0x151d   :  { %v2170_v25 = vpop.f32.mrb[12].mxu0 }
0x151e   :  { %2174 = vst.msk [vmem:[#allocation17] sm:$0x3] %vm2011_vm6, %v2170_v25  ;;  %v2618_v26 = vpop.f32.mrb[13].mxu0 }
0x151f   :  { %3197 = shalt.err (!%p3194_p6)
}
0x1520   :  { %s3198_s2 = scalar_lea.hbm %s4063_s17, 32 }
0x1521   :  { %p3199_p7 = scmp.ne.s32.totalorder %s4063_s17, %s3198_s2  ;;  %p3202_p8 = scmp.lt.u32.totalorder %s3198_s2, %s4063_s17 }
0x1523   :  { %p3204_p9 = pnand %p3202_p8, %p3199_p7 }
0x1525   :  { %3207 = shalt.err (!%p3204_p9)
}
0x1526   :  { %2184 = dma.vmem_to_hbm [thread:$0]  %s2182_s30, 32, %s4063_s17, [#allocation4]  }
0x1527   :  { %3218 = dma.done.wait [#allocation4], 32  }
0x1528   :  { %3219 = vsyncadd [#allocation4], 4294967264 }
0x1529   :  { %2188 = vsyncpa [#allocation3], 1 }
0x152a   :  { %2189 = vsyncpa [#allocation6], 1 }
0x152b   :  { %2190 = vsyncpa [#allocation9], 1 }
0x152c   :  { %2191 = vsyncpa [#allocation12], 1 }
0x152d   :  { %2192 = vsyncpa [#allocation15], 1 }
0x152e   :  { %2193 = vsyncpa [#allocation4], 1 }

</bundles_post_ra>
